<compile_context>
chip_gen: v5e
topology: v5e:2x2
jax: 0.10.0
libtpu: 0.0.40
codegen_flags: <defaults>
</compile_context>

<pallas_src>
import functools

import jax
import jax.numpy as jnp
from jax import lax
from jax.experimental import pallas as pl
from jax.experimental.pallas import tpu as pltpu


# ---------------------------------------------------------------------------
# Pallas kernel: one grid step == `t_block` time steps of ONE direction
# grid = (direction, time_block); direction is "parallel", time is "arbitrary"
# ---------------------------------------------------------------------------
def _bilstm_kernel(lens_ref, gates_ref, wh_ref,
                   out_ref, h_fin_ref, c_fin_ref,
                   h_sc, c_sc, *, hidden_size, t_block):
    H = hidden_size
    Tt = t_block
    d = pl.program_id(0)            # 0 = forward, 1 = backward
    i = pl.program_id(1)            # time-block index within this direction
    nblk = pl.num_programs(1)

    @pl.when(i == 0)                # fresh recurrent state at start of each pass
    def _():
        h_sc[...] = jnp.zeros_like(h_sc)
        c_sc[...] = jnp.zeros_like(c_sc)

    lens = lens_ref[...]            # (B, 1) int32
    wh = wh_ref[...]                # (H, 4H) f32 -- this direction's W_hh^T

    # First (padded-)time index covered by this grid step's gate block.
    blk = i + d * (nblk - 1 - 2 * i)          # i (fwd)  |  nblk-1-i (bwd)
    base = blk * Tt

    def sigm(x):                    # sigmoid via tanh: one EUP op instead of exp+recip
        return 0.5 * jnp.tanh(0.5 * x) + 0.5

    def step(s, carry):
        h, c = carry
        r = s + d * (Tt - 1 - 2 * s)          # row in block: s (fwd) | Tt-1-s (bwd)
        t_glob = base + r
        # Input projection already folded into gates_ref (hoisted out of the loop).
        g = gates_ref[r] + jnp.dot(h, wh, preferred_element_type=jnp.float32)  # (B, 4H)
        i_g = sigm(g[:, 0 * H:1 * H])
        f_g = sigm(g[:, 1 * H:2 * H])
        g_g = jnp.tanh(g[:, 2 * H:3 * H])
        o_g = sigm(g[:, 3 * H:4 * H])
        c_new = f_g * c + i_g * g_g
        h_new = o_g * jnp.tanh(c_new)
        m = t_glob < lens                     # (B, 1): freeze state past row length
        h = jnp.where(m, h_new, h)
        c = jnp.where(m, c_new, c)
        out_ref[r] = jnp.where(m, h_new, 0.0)  # padded steps emit 0
        return h, c

    h, c = lax.fori_loop(0, Tt, step, (h_sc[...], c_sc[...]), unroll=True)
    h_sc[...] = h
    c_sc[...] = c
    # Written every grid step so the resident (constant-index) output block is
    # always valid even if the pipeliner writes it back early.
    h_fin_ref[...] = h
    c_fin_ref[...] = c


# ---------------------------------------------------------------------------
# Wrapper (mirrors RNNEncoder.forward with bidirect=True)
# ---------------------------------------------------------------------------
def rnn_encoder_forward(embedded_words, input_lens, params, *, t_block=8):
    """embedded_words: (B, T, I) batch-first (like the PyTorch module).
    input_lens: (B,) int, sorted descending (pack_padded_sequence contract).
    Returns (output (max_len, B, 2H), context_mask (B, max_len) bool, (new_h, new_c))."""
    B, T, I = embedded_words.shape
    H = params["w_hh_f"].shape[1]
    G = 4 * H

    # ---- hoisted, once-per-call prep (plain XLA glue) ----------------------
    x = jnp.transpose(embedded_words, (1, 0, 2)).astype(jnp.float32)     # (T, B, I)
    t_block = max(1, min(t_block, T))
    n_blk = -(-T // t_block)                                             # ceil div
    T_pad = n_blk * t_block
    if T_pad != T:
        x = jnp.pad(x, ((0, T_pad - T), (0, 0), (0, 0)))                 # masked anyway

    # Per-direction input projection as ONE big matmul (M = T_pad*B fills MXU).
    wx = jnp.stack([params["w_ih_f"].T, params["w_ih_b"].T], axis=0)     # (2, I, 4H)
    bg = jnp.stack([params["b_ih_f"] + params["b_hh_f"],
                    params["b_ih_b"] + params["b_hh_b"]], axis=0)        # (2, 4H)
    gates_in = (jnp.einsum("tbi,dih->dtbh", x, wx,
                           preferred_element_type=jnp.float32)
                + bg[:, None, None, :])                                  # (2, T_pad, B, 4H)

    wh = jnp.stack([params["w_hh_f"].T, params["w_hh_b"].T], axis=0)     # (2, H, 4H)
    lens2d = input_lens.astype(jnp.int32)[:, None]                       # (B, 1)

    fold_out = (H % 128) == 0     # lane-dense stores + concat-free output layout

    def tblk(d, i):               # time block read/written by grid step (d, i)
        return i + d * (n_blk - 1 - 2 * i)

    in_specs = [
        pl.BlockSpec((B, 1), lambda d, i: (0, 0)),                               # lens (resident)
        pl.BlockSpec((None, t_block, B, G), lambda d, i: (d, tblk(d, i), 0, 0)), # gate inputs
        pl.BlockSpec((None, H, G), lambda d, i: (d, 0, 0)),                      # W_hh^T (per dir)
    ]
    if fold_out:
        out_shape_main = jax.ShapeDtypeStruct((T_pad, B, 2 * H), jnp.float32)
        out_spec_main = pl.BlockSpec((t_block, B, H), lambda d, i: (tblk(d, i), 0, d))
    else:
        # TODO(synk): for H not a multiple of 128 the halves stay separate
        # (lane-masked stores); one extra HBM pass concatenates them below.
        out_shape_main = jax.ShapeDtypeStruct((2, T_pad, B, H), jnp.float32)
        out_spec_main = pl.BlockSpec((None, t_block, B, H),
                                     lambda d, i: (d, tblk(d, i), 0, 0))

    # Advisory cost estimate: in-kernel recurrent matmuls + gate nonlinearities.
    flops = 2 * 2 * T_pad * B * H * G
    transcendentals = 2 * T_pad * B * 5 * H
    bytes_accessed = 4 * (gates_in.size + T_pad * B * 2 * H + wh.size + 4 * B * H + B)

    # Only raise the scoped VMEM limit when the working set is actually large
    # (keeps the tiny-shape config identical to the known-good defaults).
    vmem_est = 4 * (2 * t_block * B * G + 2 * t_block * B * H + 2 * H * G + 8 * B * H + 2 * B)
    compiler_kwargs = dict(dimension_semantics=("parallel", "arbitrary"))
    if vmem_est > 8 * 1024 * 1024:
        compiler_kwargs["vmem_limit_bytes"] = int(min(64 * 1024 * 1024, 4 * vmem_est))

    kernel = functools.partial(_bilstm_kernel, hidden_size=H, t_block=t_block)

    out, h_fin, c_fin = pl.pallas_call(
        kernel,
        out_shape=(out_shape_main,
                   jax.ShapeDtypeStruct((2, B, H), jnp.float32),
                   jax.ShapeDtypeStruct((2, B, H), jnp.float32)),
        grid_spec=pltpu.PrefetchScalarGridSpec(
            num_scalar_prefetch=0,
            grid=(2, n_blk),                                  # (direction, time-block)
            in_specs=in_specs,
            out_specs=(out_spec_main,
                       pl.BlockSpec((None, B, H), lambda d, i: (d, 0, 0)),   # final h
                       pl.BlockSpec((None, B, H), lambda d, i: (d, 0, 0))),  # final c
            scratch_shapes=[pltpu.VMEM((B, H), jnp.float32),                 # h state
                            pltpu.VMEM((B, H), jnp.float32)],                # c state
        ),
        compiler_params=pltpu.CompilerParams(**compiler_kwargs),
        cost_estimate=pl.CostEstimate(flops=int(flops),
                                      transcendentals=int(transcendentals),
                                      bytes_accessed=int(bytes_accessed)),
    )(lens2d, gates_in, wh)

    if fold_out:
        output_full = out                                         # (T_pad, B, 2H), fwd||bwd
    else:
        output_full = jnp.concatenate([out[0], out[1]], axis=-1)  # (T_pad, B, 2H)

    # pad_packed_sequence / sent_lens_to_mask: max_length = input_lens[0]
    # (mirrors `input_lens.data[0].item()`: requires a concrete value and lens
    #  sorted descending -- same contract as the nn.Module, not jit-traceable).
    max_length = int(input_lens[0])
    output = output_full[:max_length]
    context_mask = jnp.arange(max_length)[None, :] < input_lens[:, None]   # (B, max_len)

    # reduce_h_W / reduce_c_W: two tiny XLA matmuls on the final states, split
    # per direction so [h_f | h_b] is never materialized as a concat.
    wrh, brh = params["w_reduce_h"], params["b_reduce_h"]
    wrc, brc = params["w_reduce_c"], params["b_reduce_c"]
    new_h = h_fin[0] @ wrh[:, :H].T + h_fin[1] @ wrh[:, H:].T + brh
    new_c = c_fin[0] @ wrc[:, :H].T + c_fin[1] @ wrc[:, H:].T + brc

    return output, context_mask, (new_h, new_c)


# ---------------------------------------------------------------------------
# Pure-JAX reference (mirrors PyTorch packed bidirectional LSTM op-for-op)
# ---------------------------------------------------------------------------
def reference_forward(embedded_words, input_lens, p):
    B, T, I = embedded_words.shape
    H = p["w_hh_f"].shape[1]
    lens = input_lens[:, None]

    def cell(x_t, h, c, w_ih, w_hh, b_ih, b_hh):
        g = x_t @ w_ih.T + h @ w_hh.T + b_ih + b_hh
        i = jax.nn.sigmoid(g[:, :H])
        f = jax.nn.sigmoid(g[:, H:2 * H])
        gg = jnp.tanh(g[:, 2 * H:3 * H])
        o = jax.nn.sigmoid(g[:, 3 * H:])
        c_new = f * c + i * gg
        return o * jnp.tanh(c_new), c_new

    h = jnp.zeros((B, H)); c = jnp.zeros((B, H)); outs_f = []
    for t in range(T):
        hn, cn = cell(embedded_words[:, t], h, c,
                      p["w_ih_f"], p["w_hh_f"], p["b_ih_f"], p["b_hh_f"])
        m = t < lens
        h = jnp.where(m, hn, h); c = jnp.where(m, cn, c)
        outs_f.append(jnp.where(m, hn, 0.0))
    hf_fin, cf_fin = h, c

    h = jnp.zeros((B, H)); c = jnp.zeros((B, H)); outs_b = [None] * T
    for t in range(T - 1, -1, -1):
        hn, cn = cell(embedded_words[:, t], h, c,
                      p["w_ih_b"], p["w_hh_b"], p["b_ih_b"], p["b_hh_b"])
        m = t < lens
        h = jnp.where(m, hn, h); c = jnp.where(m, cn, c)
        outs_b[t] = jnp.where(m, hn, 0.0)
    hb_fin, cb_fin = h, c

    output = jnp.stack(
        [jnp.concatenate([outs_f[t], outs_b[t]], axis=-1) for t in range(T)], axis=0)
    max_length = int(input_lens[0])
    output = output[:max_length]
    context_mask = jnp.arange(max_length)[None, :] < lens

    new_h = jnp.concatenate([hf_fin, hb_fin], -1) @ p["w_reduce_h"].T + p["b_reduce_h"]
    new_c = jnp.concatenate([cf_fin, cb_fin], -1) @ p["w_reduce_c"].T + p["b_reduce_c"]
    return output, context_mask, (new_h, new_c)


def _xavier_uniform(key, shape):
    fan_out, fan_in = shape
    limit = (6.0 / (fan_in + fan_out)) ** 0.5
    return jax.random.uniform(key, shape, jnp.float32, -limit, limit)


def _make_params(ks, input_size, hidden_size):
    I, H = input_size, hidden_size
    # shapes match nn.LSTM(bidirectional=True) + nn.Linear(2H, H); LSTM biases 0 per init_weight
    return {
        "w_ih_f": _xavier_uniform(ks[0], (4 * H, I)),
        "w_hh_f": _xavier_uniform(ks[1], (4 * H, H)),
        "b_ih_f": jnp.zeros((4 * H,), jnp.float32),
        "b_hh_f": jnp.zeros((4 * H,), jnp.float32),
        "w_ih_b": _xavier_uniform(ks[2], (4 * H, I)),
        "w_hh_b": _xavier_uniform(ks[3], (4 * H, H)),
        "b_ih_b": jnp.zeros((4 * H,), jnp.float32),
        "b_hh_b": jnp.zeros((4 * H,), jnp.float32),
        "w_reduce_h": _xavier_uniform(ks[4], (H, 2 * H)),
        "b_reduce_h": 0.01 * _xavier_uniform(ks[5], (1, H))[0],
        "w_reduce_c": _xavier_uniform(ks[6], (H, 2 * H)),
        "b_reduce_c": 0.01 * _xavier_uniform(ks[7], (1, H))[0],
    }


def _run_and_check(key, B, T, I, H, lens_list, t_block=8):
    ks = jax.random.split(key, 10)
    params = _make_params(ks, I, H)
    embedded_words = jax.random.normal(ks[8], (B, T, I), jnp.float32)     # batch-first
    input_lens = jnp.array(lens_list, dtype=jnp.int32)                    # sorted descending

    out, mask, (new_h, new_c) = rnn_encoder_forward(
        embedded_words, input_lens, params, t_block=t_block)
    jax.block_until_ready(out)

    ref_out, ref_mask, (ref_h, ref_c) = reference_forward(embedded_words, input_lens, params)

    max_len = int(input_lens[0])
    assert out.shape == (max_len, B, 2 * H)
    assert mask.shape == (B, max_len) and mask.dtype == jnp.bool_
    assert new_h.shape == (B, H) and new_c.shape == (B, H)

    assert jnp.array_equal(mask, ref_mask)
    assert jnp.allclose(out, ref_out, atol=5e-4, rtol=5e-4)
    assert jnp.allclose(new_h, ref_h, atol=5e-4, rtol=5e-4)
    assert jnp.allclose(new_c, ref_c, atol=5e-4, rtol=5e-4)


if __name__ == "__main__":
    key = jax.random.PRNGKey(0)
    k1, k2 = jax.random.split(key)

    # Small module-consistent shape (H < 128 -> fallback two-half output layout).
    _run_and_check(k1, B=2, T=8, I=32, H=32, lens_list=[8, 5], t_block=8)

    # Lane-dense path (H % 128 == 0 -> single concat-free (T, B, 2H) output)
    # plus time padding (T=10 -> T_pad=16) and a 2-block time grid.
    _run_and_check(k2, B=2, T=10, I=32, H=128, lens_list=[10, 7], t_block=8)

    print("KERNEL_OK")
</pallas_src>

<mosaic_0001>
module attributes {stable_mosaic.version = 11 : i64} {
  func.func @_bilstm_kernel(%arg0: i32, %arg1: i32, %arg2: memref<2x1xi32, #tpu.memory_space<vmem>>, %arg3: memref<1x8x2x128xf32, #tpu.memory_space<vmem>>, %arg4: memref<1x32x128xf32, #tpu.memory_space<vmem>>, %arg5: memref<1x8x2x32xf32, #tpu.memory_space<vmem>>, %arg6: memref<1x2x32xf32, #tpu.memory_space<vmem>>, %arg7: memref<1x2x32xf32, #tpu.memory_space<vmem>>, %arg8: memref<2x32xf32, #tpu.memory_space<vmem>>, %arg9: memref<2x32xf32, #tpu.memory_space<vmem>>) attributes {dimension_semantics = [#tpu.dimension_semantics<parallel>, #tpu.dimension_semantics<arbitrary>], iteration_bounds = array<i64: 2, 1>, scalar_prefetch = 0 : i64, scratch_operands = 2 : i64, tpu.core_type = #tpu.core_type<tc>, window_params = [{pipeline_mode = #tpu.pipeline_mode<synchronous>, transform_indices = @transform_0, window_bounds = array<i64: 2, 1>}, {transform_indices = @transform_1, window_bounds = array<i64: 1, 8, 2, 128>}, {transform_indices = @transform_2, window_bounds = array<i64: 1, 32, 128>}, {transform_indices = @transform_3, window_bounds = array<i64: 1, 8, 2, 32>}, {transform_indices = @transform_4, window_bounds = array<i64: 1, 2, 32>}, {transform_indices = @transform_5, window_bounds = array<i64: 1, 2, 32>}]} {
    %c0_i32 = arith.constant 0 : i32
    %0 = arith.cmpi eq, %arg1, %c0_i32 : i32
    %1 = arith.extui %0 : i1 to i32
    %c0_i32_0 = arith.constant 0 : i32
    %2 = arith.cmpi ne, %1, %c0_i32_0 : i32
    scf.if %2 {
      %cst_174 = arith.constant 0.000000e+00 : f32
      %477 = vector.broadcast %cst_174 : f32 to vector<2x32xf32>
      %c0_175 = arith.constant 0 : index
      %c0_176 = arith.constant 0 : index
      %478 = vector.load %arg8[%c0_175, %c0_176] : memref<2x32xf32, #tpu.memory_space<vmem>>, vector<2x32xf32>
      tpu.vector_store %arg8[%c0_175, %c0_176], %477 {strides = array<i32>} : memref<2x32xf32, #tpu.memory_space<vmem>>, vector<2x32xf32>,
      %cst_177 = arith.constant 0.000000e+00 : f32
      %479 = vector.broadcast %cst_177 : f32 to vector<2x32xf32>
      %c0_178 = arith.constant 0 : index
      %c0_179 = arith.constant 0 : index
      %480 = vector.load %arg9[%c0_178, %c0_179] : memref<2x32xf32, #tpu.memory_space<vmem>>, vector<2x32xf32>
      tpu.vector_store %arg9[%c0_178, %c0_179], %479 {strides = array<i32>} : memref<2x32xf32, #tpu.memory_space<vmem>>, vector<2x32xf32>,
    } else {
    }
    %c0 = arith.constant 0 : index
    %c0_1 = arith.constant 0 : index
    %3 = vector.load %arg2[%c0, %c0_1] : memref<2x1xi32, #tpu.memory_space<vmem>>, vector<2x1xi32>
    %c0_2 = arith.constant 0 : index
    %c0_3 = arith.constant 0 : index
    %c0_4 = arith.constant 0 : index
    %4 = vector.load %arg4[%c0_2, %c0_3, %c0_4] : memref<1x32x128xf32, #tpu.memory_space<vmem>>, vector<1x32x128xf32>
    %5 = vector.shape_cast %4 : vector<1x32x128xf32> to vector<32x128xf32>
    %c2_i32 = arith.constant 2 : i32
    %6 = arith.muli %c2_i32, %arg1 : i32
    %c0_i32_5 = arith.constant 0 : i32
    %7 = arith.subi %c0_i32_5, %6 : i32
    %8 = arith.muli %arg0, %7 : i32
    %9 = arith.addi %arg1, %8 : i32
    %c8_i32 = arith.constant 8 : i32
    %10 = arith.muli %9, %c8_i32 : i32
    %c0_6 = arith.constant 0 : index
    %c0_7 = arith.constant 0 : index
    %11 = vector.load %arg8[%c0_6, %c0_7] : memref<2x32xf32, #tpu.memory_space<vmem>>, vector<2x32xf32>
    %c0_8 = arith.constant 0 : index
    %c0_9 = arith.constant 0 : index
    %12 = vector.load %arg9[%c0_8, %c0_9] : memref<2x32xf32, #tpu.memory_space<vmem>>, vector<2x32xf32>
    %c0_i32_10 = arith.constant 0 : i32
    %c2_i32_11 = arith.constant 2 : i32
    %13 = arith.muli %c2_i32_11, %c0_i32_10 : i32
    %c7_i32 = arith.constant 7 : i32
    %14 = arith.subi %c7_i32, %13 : i32
    %15 = arith.muli %arg0, %14 : i32
    %16 = arith.addi %c0_i32_10, %15 : i32
    %17 = arith.addi %10, %16 : i32
    %c0_12 = arith.constant 0 : index
    %18 = arith.index_cast %16 : i32 to index
    %c0_13 = arith.constant 0 : index
    %c0_14 = arith.constant 0 : index
    %19 = vector.load %arg3[%c0_12, %18, %c0_13, %c0_14] : memref<1x8x2x128xf32, #tpu.memory_space<vmem>>, vector<1x1x2x128xf32>
    %20 = vector.shape_cast %19 : vector<1x1x2x128xf32> to vector<2x128xf32>
    %cst = arith.constant dense<0.000000e+00> : vector<2x128xf32>
    %21 = tpu.matmul %11, %5, %cst {dimension_numbers = #tpu.dot_dimension_numbers<[1], [0], [0], [1], [0, 0, 1, 1], [], []>} : vector<2x32xf32>, vector<32x128xf32>, vector<2x128xf32> -> vector<2x128xf32>
    %22 = arith.addf %20, %21 : vector<2x128xf32>
    %23 = vector.extract_strided_slice %22 {offsets = [0, 0], sizes = [2, 32], strides = [1, 1]} : vector<2x128xf32> to vector<2x32xf32>
    %cst_15 = arith.constant 5.000000e-01 : f32
    %24 = vector.broadcast %cst_15 : f32 to vector<2x32xf32>
    %25 = arith.mulf %24, %23 : vector<2x32xf32>
    %26 = math.tanh %25 : vector<2x32xf32>
    %cst_16 = arith.constant 5.000000e-01 : f32
    %27 = vector.broadcast %cst_16 : f32 to vector<2x32xf32>
    %28 = arith.mulf %27, %26 : vector<2x32xf32>
    %cst_17 = arith.constant 5.000000e-01 : f32
    %29 = vector.broadcast %cst_17 : f32 to vector<2x32xf32>
    %30 = arith.addf %28, %29 : vector<2x32xf32>
    %31 = vector.extract_strided_slice %22 {offsets = [0, 32], sizes = [2, 32], strides = [1, 1]} : vector<2x128xf32> to vector<2x32xf32>
    %cst_18 = arith.constant 5.000000e-01 : f32
    %32 = vector.broadcast %cst_18 : f32 to vector<2x32xf32>
    %33 = arith.mulf %32, %31 : vector<2x32xf32>
    %34 = math.tanh %33 : vector<2x32xf32>
    %cst_19 = arith.constant 5.000000e-01 : f32
    %35 = vector.broadcast %cst_19 : f32 to vector<2x32xf32>
    %36 = arith.mulf %35, %34 : vector<2x32xf32>
    %cst_20 = arith.constant 5.000000e-01 : f32
    %37 = vector.broadcast %cst_20 : f32 to vector<2x32xf32>
    %38 = arith.addf %36, %37 : vector<2x32xf32>
    %39 = vector.extract_strided_slice %22 {offsets = [0, 64], sizes = [2, 32], strides = [1, 1]} : vector<2x128xf32> to vector<2x32xf32>
    %40 = math.tanh %39 : vector<2x32xf32>
    %41 = vector.extract_strided_slice %22 {offsets = [0, 96], sizes = [2, 32], strides = [1, 1]} : vector<2x128xf32> to vector<2x32xf32>
    %cst_21 = arith.constant 5.000000e-01 : f32
    %42 = vector.broadcast %cst_21 : f32 to vector<2x32xf32>
    %43 = arith.mulf %42, %41 : vector<2x32xf32>
    %44 = math.tanh %43 : vector<2x32xf32>
    %cst_22 = arith.constant 5.000000e-01 : f32
    %45 = vector.broadcast %cst_22 : f32 to vector<2x32xf32>
    %46 = arith.mulf %45, %44 : vector<2x32xf32>
    %cst_23 = arith.constant 5.000000e-01 : f32
    %47 = vector.broadcast %cst_23 : f32 to vector<2x32xf32>
    %48 = arith.addf %46, %47 : vector<2x32xf32>
    %49 = arith.mulf %38, %12 : vector<2x32xf32>
    %50 = arith.mulf %30, %40 : vector<2x32xf32>
    %51 = arith.addf %49, %50 : vector<2x32xf32>
    %52 = math.tanh %51 : vector<2x32xf32>
    %53 = arith.mulf %48, %52 : vector<2x32xf32>
    %54 = vector.broadcast %17 : i32 to vector<2x1xi32>
    %55 = arith.cmpi slt, %54, %3 : vector<2x1xi32>
    %56 = vector.shape_cast %55 : vector<2x1xi1> to vector<2x1xi1>
    %57 = vector.broadcast %56 : vector<2x1xi1> to vector<2x32xi1>
    %58 = arith.select %57, %53, %11 : vector<2x32xi1>, vector<2x32xf32>
    %59 = vector.shape_cast %55 : vector<2x1xi1> to vector<2x1xi1>
    %60 = vector.broadcast %59 : vector<2x1xi1> to vector<2x32xi1>
    %61 = arith.select %60, %51, %12 : vector<2x32xi1>, vector<2x32xf32>
    %cst_24 = arith.constant 0.000000e+00 : f32
    %62 = vector.shape_cast %55 : vector<2x1xi1> to vector<2x1xi1>
    %63 = vector.broadcast %62 : vector<2x1xi1> to vector<2x32xi1>
    %64 = vector.broadcast %cst_24 : f32 to vector<2x32xf32>
    %65 = arith.select %63, %53, %64 : vector<2x32xi1>, vector<2x32xf32>
    %c0_25 = arith.constant 0 : index
    %66 = arith.index_cast %16 : i32 to index
    %c0_26 = arith.constant 0 : index
    %c0_27 = arith.constant 0 : index
    %67 = vector.load %arg5[%c0_25, %66, %c0_26, %c0_27] : memref<1x8x2x32xf32, #tpu.memory_space<vmem>>, vector<1x1x2x32xf32>
    %68 = vector.shape_cast %67 : vector<1x1x2x32xf32> to vector<2x32xf32>
    %69 = vector.shape_cast %65 : vector<2x32xf32> to vector<1x1x2x32xf32>
    tpu.vector_store %arg5[%c0_25, %66, %c0_26, %c0_27], %69 {strides = array<i32>} : memref<1x8x2x32xf32, #tpu.memory_space<vmem>>, vector<1x1x2x32xf32>,
    %c1_i32 = arith.constant 1 : i32
    %c2_i32_28 = arith.constant 2 : i32
    %70 = arith.muli %c2_i32_28, %c1_i32 : i32
    %c7_i32_29 = arith.constant 7 : i32
    %71 = arith.subi %c7_i32_29, %70 : i32
    %72 = arith.muli %arg0, %71 : i32
    %73 = arith.addi %c1_i32, %72 : i32
    %74 = arith.addi %10, %73 : i32
    %c0_30 = arith.constant 0 : index
    %75 = arith.index_cast %73 : i32 to index
    %c0_31 = arith.constant 0 : index
    %c0_32 = arith.constant 0 : index
    %76 = vector.load %arg3[%c0_30, %75, %c0_31, %c0_32] : memref<1x8x2x128xf32, #tpu.memory_space<vmem>>, vector<1x1x2x128xf32>
    %77 = vector.shape_cast %76 : vector<1x1x2x128xf32> to vector<2x128xf32>
    %cst_33 = arith.constant dense<0.000000e+00> : vector<2x128xf32>
    %78 = tpu.matmul %58, %5, %cst_33 {dimension_numbers = #tpu.dot_dimension_numbers<[1], [0], [0], [1], [0, 0, 1, 1], [], []>} : vector<2x32xf32>, vector<32x128xf32>, vector<2x128xf32> -> vector<2x128xf32>
    %79 = arith.addf %77, %78 : vector<2x128xf32>
    %80 = vector.extract_strided_slice %79 {offsets = [0, 0], sizes = [2, 32], strides = [1, 1]} : vector<2x128xf32> to vector<2x32xf32>
    %cst_34 = arith.constant 5.000000e-01 : f32
    %81 = vector.broadcast %cst_34 : f32 to vector<2x32xf32>
    %82 = arith.mulf %81, %80 : vector<2x32xf32>
    %83 = math.tanh %82 : vector<2x32xf32>
    %cst_35 = arith.constant 5.000000e-01 : f32
    %84 = vector.broadcast %cst_35 : f32 to vector<2x32xf32>
    %85 = arith.mulf %84, %83 : vector<2x32xf32>
    %cst_36 = arith.constant 5.000000e-01 : f32
    %86 = vector.broadcast %cst_36 : f32 to vector<2x32xf32>
    %87 = arith.addf %85, %86 : vector<2x32xf32>
    %88 = vector.extract_strided_slice %79 {offsets = [0, 32], sizes = [2, 32], strides = [1, 1]} : vector<2x128xf32> to vector<2x32xf32>
    %cst_37 = arith.constant 5.000000e-01 : f32
    %89 = vector.broadcast %cst_37 : f32 to vector<2x32xf32>
    %90 = arith.mulf %89, %88 : vector<2x32xf32>
    %91 = math.tanh %90 : vector<2x32xf32>
    %cst_38 = arith.constant 5.000000e-01 : f32
    %92 = vector.broadcast %cst_38 : f32 to vector<2x32xf32>
    %93 = arith.mulf %92, %91 : vector<2x32xf32>
    %cst_39 = arith.constant 5.000000e-01 : f32
    %94 = vector.broadcast %cst_39 : f32 to vector<2x32xf32>
    %95 = arith.addf %93, %94 : vector<2x32xf32>
    %96 = vector.extract_strided_slice %79 {offsets = [0, 64], sizes = [2, 32], strides = [1, 1]} : vector<2x128xf32> to vector<2x32xf32>
    %97 = math.tanh %96 : vector<2x32xf32>
    %98 = vector.extract_strided_slice %79 {offsets = [0, 96], sizes = [2, 32], strides = [1, 1]} : vector<2x128xf32> to vector<2x32xf32>
    %cst_40 = arith.constant 5.000000e-01 : f32
    %99 = vector.broadcast %cst_40 : f32 to vector<2x32xf32>
    %100 = arith.mulf %99, %98 : vector<2x32xf32>
    %101 = math.tanh %100 : vector<2x32xf32>
    %cst_41 = arith.constant 5.000000e-01 : f32
    %102 = vector.broadcast %cst_41 : f32 to vector<2x32xf32>
    %103 = arith.mulf %102, %101 : vector<2x32xf32>
    %cst_42 = arith.constant 5.000000e-01 : f32
    %104 = vector.broadcast %cst_42 : f32 to vector<2x32xf32>
    %105 = arith.addf %103, %104 : vector<2x32xf32>
    %106 = arith.mulf %95, %61 : vector<2x32xf32>
    %107 = arith.mulf %87, %97 : vector<2x32xf32>
    %108 = arith.addf %106, %107 : vector<2x32xf32>
    %109 = math.tanh %108 : vector<2x32xf32>
    %110 = arith.mulf %105, %109 : vector<2x32xf32>
    %111 = vector.broadcast %74 : i32 to vector<2x1xi32>
    %112 = arith.cmpi slt, %111, %3 : vector<2x1xi32>
    %113 = vector.shape_cast %112 : vector<2x1xi1> to vector<2x1xi1>
    %114 = vector.broadcast %113 : vector<2x1xi1> to vector<2x32xi1>
    %115 = arith.select %114, %110, %58 : vector<2x32xi1>, vector<2x32xf32>
    %116 = vector.shape_cast %112 : vector<2x1xi1> to vector<2x1xi1>
    %117 = vector.broadcast %116 : vector<2x1xi1> to vector<2x32xi1>
    %118 = arith.select %117, %108, %61 : vector<2x32xi1>, vector<2x32xf32>
    %cst_43 = arith.constant 0.000000e+00 : f32
    %119 = vector.shape_cast %112 : vector<2x1xi1> to vector<2x1xi1>
    %120 = vector.broadcast %119 : vector<2x1xi1> to vector<2x32xi1>
    %121 = vector.broadcast %cst_43 : f32 to vector<2x32xf32>
    %122 = arith.select %120, %110, %121 : vector<2x32xi1>, vector<2x32xf32>
    %c0_44 = arith.constant 0 : index
    %123 = arith.index_cast %73 : i32 to index
    %c0_45 = arith.constant 0 : index
    %c0_46 = arith.constant 0 : index
    %124 = vector.load %arg5[%c0_44, %123, %c0_45, %c0_46] : memref<1x8x2x32xf32, #tpu.memory_space<vmem>>, vector<1x1x2x32xf32>
    %125 = vector.shape_cast %124 : vector<1x1x2x32xf32> to vector<2x32xf32>
    %126 = vector.shape_cast %122 : vector<2x32xf32> to vector<1x1x2x32xf32>
    tpu.vector_store %arg5[%c0_44, %123, %c0_45, %c0_46], %126 {strides = array<i32>} : memref<1x8x2x32xf32, #tpu.memory_space<vmem>>, vector<1x1x2x32xf32>,
    %c2_i32_47 = arith.constant 2 : i32
    %c2_i32_48 = arith.constant 2 : i32
    %127 = arith.muli %c2_i32_48, %c2_i32_47 : i32
    %c7_i32_49 = arith.constant 7 : i32
    %128 = arith.subi %c7_i32_49, %127 : i32
    %129 = arith.muli %arg0, %128 : i32
    %130 = arith.addi %c2_i32_47, %129 : i32
    %131 = arith.addi %10, %130 : i32
    %c0_50 = arith.constant 0 : index
    %132 = arith.index_cast %130 : i32 to index
    %c0_51 = arith.constant 0 : index
    %c0_52 = arith.constant 0 : index
    %133 = vector.load %arg3[%c0_50, %132, %c0_51, %c0_52] : memref<1x8x2x128xf32, #tpu.memory_space<vmem>>, vector<1x1x2x128xf32>
    %134 = vector.shape_cast %133 : vector<1x1x2x128xf32> to vector<2x128xf32>
    %cst_53 = arith.constant dense<0.000000e+00> : vector<2x128xf32>
    %135 = tpu.matmul %115, %5, %cst_53 {dimension_numbers = #tpu.dot_dimension_numbers<[1], [0], [0], [1], [0, 0, 1, 1], [], []>} : vector<2x32xf32>, vector<32x128xf32>, vector<2x128xf32> -> vector<2x128xf32>
    %136 = arith.addf %134, %135 : vector<2x128xf32>
    %137 = vector.extract_strided_slice %136 {offsets = [0, 0], sizes = [2, 32], strides = [1, 1]} : vector<2x128xf32> to vector<2x32xf32>
    %cst_54 = arith.constant 5.000000e-01 : f32
    %138 = vector.broadcast %cst_54 : f32 to vector<2x32xf32>
    %139 = arith.mulf %138, %137 : vector<2x32xf32>
    %140 = math.tanh %139 : vector<2x32xf32>
    %cst_55 = arith.constant 5.000000e-01 : f32
    %141 = vector.broadcast %cst_55 : f32 to vector<2x32xf32>
    %142 = arith.mulf %141, %140 : vector<2x32xf32>
    %cst_56 = arith.constant 5.000000e-01 : f32
    %143 = vector.broadcast %cst_56 : f32 to vector<2x32xf32>
    %144 = arith.addf %142, %143 : vector<2x32xf32>
    %145 = vector.extract_strided_slice %136 {offsets = [0, 32], sizes = [2, 32], strides = [1, 1]} : vector<2x128xf32> to vector<2x32xf32>
    %cst_57 = arith.constant 5.000000e-01 : f32
    %146 = vector.broadcast %cst_57 : f32 to vector<2x32xf32>
    %147 = arith.mulf %146, %145 : vector<2x32xf32>
    %148 = math.tanh %147 : vector<2x32xf32>
    %cst_58 = arith.constant 5.000000e-01 : f32
    %149 = vector.broadcast %cst_58 : f32 to vector<2x32xf32>
    %150 = arith.mulf %149, %148 : vector<2x32xf32>
    %cst_59 = arith.constant 5.000000e-01 : f32
    %151 = vector.broadcast %cst_59 : f32 to vector<2x32xf32>
    %152 = arith.addf %150, %151 : vector<2x32xf32>
    %153 = vector.extract_strided_slice %136 {offsets = [0, 64], sizes = [2, 32], strides = [1, 1]} : vector<2x128xf32> to vector<2x32xf32>
    %154 = math.tanh %153 : vector<2x32xf32>
    %155 = vector.extract_strided_slice %136 {offsets = [0, 96], sizes = [2, 32], strides = [1, 1]} : vector<2x128xf32> to vector<2x32xf32>
    %cst_60 = arith.constant 5.000000e-01 : f32
    %156 = vector.broadcast %cst_60 : f32 to vector<2x32xf32>
    %157 = arith.mulf %156, %155 : vector<2x32xf32>
    %158 = math.tanh %157 : vector<2x32xf32>
    %cst_61 = arith.constant 5.000000e-01 : f32
    %159 = vector.broadcast %cst_61 : f32 to vector<2x32xf32>
    %160 = arith.mulf %159, %158 : vector<2x32xf32>
    %cst_62 = arith.constant 5.000000e-01 : f32
    %161 = vector.broadcast %cst_62 : f32 to vector<2x32xf32>
    %162 = arith.addf %160, %161 : vector<2x32xf32>
    %163 = arith.mulf %152, %118 : vector<2x32xf32>
    %164 = arith.mulf %144, %154 : vector<2x32xf32>
    %165 = arith.addf %163, %164 : vector<2x32xf32>
    %166 = math.tanh %165 : vector<2x32xf32>
    %167 = arith.mulf %162, %166 : vector<2x32xf32>
    %168 = vector.broadcast %131 : i32 to vector<2x1xi32>
    %169 = arith.cmpi slt, %168, %3 : vector<2x1xi32>
    %170 = vector.shape_cast %169 : vector<2x1xi1> to vector<2x1xi1>
    %171 = vector.broadcast %170 : vector<2x1xi1> to vector<2x32xi1>
    %172 = arith.select %171, %167, %115 : vector<2x32xi1>, vector<2x32xf32>
    %173 = vector.shape_cast %169 : vector<2x1xi1> to vector<2x1xi1>
    %174 = vector.broadcast %173 : vector<2x1xi1> to vector<2x32xi1>
    %175 = arith.select %174, %165, %118 : vector<2x32xi1>, vector<2x32xf32>
    %cst_63 = arith.constant 0.000000e+00 : f32
    %176 = vector.shape_cast %169 : vector<2x1xi1> to vector<2x1xi1>
    %177 = vector.broadcast %176 : vector<2x1xi1> to vector<2x32xi1>
    %178 = vector.broadcast %cst_63 : f32 to vector<2x32xf32>
    %179 = arith.select %177, %167, %178 : vector<2x32xi1>, vector<2x32xf32>
    %c0_64 = arith.constant 0 : index
    %180 = arith.index_cast %130 : i32 to index
    %c0_65 = arith.constant 0 : index
    %c0_66 = arith.constant 0 : index
    %181 = vector.load %arg5[%c0_64, %180, %c0_65, %c0_66] : memref<1x8x2x32xf32, #tpu.memory_space<vmem>>, vector<1x1x2x32xf32>
    %182 = vector.shape_cast %181 : vector<1x1x2x32xf32> to vector<2x32xf32>
    %183 = vector.shape_cast %179 : vector<2x32xf32> to vector<1x1x2x32xf32>
    tpu.vector_store %arg5[%c0_64, %180, %c0_65, %c0_66], %183 {strides = array<i32>} : memref<1x8x2x32xf32, #tpu.memory_space<vmem>>, vector<1x1x2x32xf32>,
    %c3_i32 = arith.constant 3 : i32
    %c2_i32_67 = arith.constant 2 : i32
    %184 = arith.muli %c2_i32_67, %c3_i32 : i32
    %c7_i32_68 = arith.constant 7 : i32
    %185 = arith.subi %c7_i32_68, %184 : i32
    %186 = arith.muli %arg0, %185 : i32
    %187 = arith.addi %c3_i32, %186 : i32
    %188 = arith.addi %10, %187 : i32
    %c0_69 = arith.constant 0 : index
    %189 = arith.index_cast %187 : i32 to index
    %c0_70 = arith.constant 0 : index
    %c0_71 = arith.constant 0 : index
    %190 = vector.load %arg3[%c0_69, %189, %c0_70, %c0_71] : memref<1x8x2x128xf32, #tpu.memory_space<vmem>>, vector<1x1x2x128xf32>
    %191 = vector.shape_cast %190 : vector<1x1x2x128xf32> to vector<2x128xf32>
    %cst_72 = arith.constant dense<0.000000e+00> : vector<2x128xf32>
    %192 = tpu.matmul %172, %5, %cst_72 {dimension_numbers = #tpu.dot_dimension_numbers<[1], [0], [0], [1], [0, 0, 1, 1], [], []>} : vector<2x32xf32>, vector<32x128xf32>, vector<2x128xf32> -> vector<2x128xf32>
    %193 = arith.addf %191, %192 : vector<2x128xf32>
    %194 = vector.extract_strided_slice %193 {offsets = [0, 0], sizes = [2, 32], strides = [1, 1]} : vector<2x128xf32> to vector<2x32xf32>
    %cst_73 = arith.constant 5.000000e-01 : f32
    %195 = vector.broadcast %cst_73 : f32 to vector<2x32xf32>
    %196 = arith.mulf %195, %194 : vector<2x32xf32>
    %197 = math.tanh %196 : vector<2x32xf32>
    %cst_74 = arith.constant 5.000000e-01 : f32
    %198 = vector.broadcast %cst_74 : f32 to vector<2x32xf32>
    %199 = arith.mulf %198, %197 : vector<2x32xf32>
    %cst_75 = arith.constant 5.000000e-01 : f32
    %200 = vector.broadcast %cst_75 : f32 to vector<2x32xf32>
    %201 = arith.addf %199, %200 : vector<2x32xf32>
    %202 = vector.extract_strided_slice %193 {offsets = [0, 32], sizes = [2, 32], strides = [1, 1]} : vector<2x128xf32> to vector<2x32xf32>
    %cst_76 = arith.constant 5.000000e-01 : f32
    %203 = vector.broadcast %cst_76 : f32 to vector<2x32xf32>
    %204 = arith.mulf %203, %202 : vector<2x32xf32>
    %205 = math.tanh %204 : vector<2x32xf32>
    %cst_77 = arith.constant 5.000000e-01 : f32
    %206 = vector.broadcast %cst_77 : f32 to vector<2x32xf32>
    %207 = arith.mulf %206, %205 : vector<2x32xf32>
    %cst_78 = arith.constant 5.000000e-01 : f32
    %208 = vector.broadcast %cst_78 : f32 to vector<2x32xf32>
    %209 = arith.addf %207, %208 : vector<2x32xf32>
    %210 = vector.extract_strided_slice %193 {offsets = [0, 64], sizes = [2, 32], strides = [1, 1]} : vector<2x128xf32> to vector<2x32xf32>
    %211 = math.tanh %210 : vector<2x32xf32>
    %212 = vector.extract_strided_slice %193 {offsets = [0, 96], sizes = [2, 32], strides = [1, 1]} : vector<2x128xf32> to vector<2x32xf32>
    %cst_79 = arith.constant 5.000000e-01 : f32
    %213 = vector.broadcast %cst_79 : f32 to vector<2x32xf32>
    %214 = arith.mulf %213, %212 : vector<2x32xf32>
    %215 = math.tanh %214 : vector<2x32xf32>
    %cst_80 = arith.constant 5.000000e-01 : f32
    %216 = vector.broadcast %cst_80 : f32 to vector<2x32xf32>
    %217 = arith.mulf %216, %215 : vector<2x32xf32>
    %cst_81 = arith.constant 5.000000e-01 : f32
    %218 = vector.broadcast %cst_81 : f32 to vector<2x32xf32>
    %219 = arith.addf %217, %218 : vector<2x32xf32>
    %220 = arith.mulf %209, %175 : vector<2x32xf32>
    %221 = arith.mulf %201, %211 : vector<2x32xf32>
    %222 = arith.addf %220, %221 : vector<2x32xf32>
    %223 = math.tanh %222 : vector<2x32xf32>
    %224 = arith.mulf %219, %223 : vector<2x32xf32>
    %225 = vector.broadcast %188 : i32 to vector<2x1xi32>
    %226 = arith.cmpi slt, %225, %3 : vector<2x1xi32>
    %227 = vector.shape_cast %226 : vector<2x1xi1> to vector<2x1xi1>
    %228 = vector.broadcast %227 : vector<2x1xi1> to vector<2x32xi1>
    %229 = arith.select %228, %224, %172 : vector<2x32xi1>, vector<2x32xf32>
    %230 = vector.shape_cast %226 : vector<2x1xi1> to vector<2x1xi1>
    %231 = vector.broadcast %230 : vector<2x1xi1> to vector<2x32xi1>
    %232 = arith.select %231, %222, %175 : vector<2x32xi1>, vector<2x32xf32>
    %cst_82 = arith.constant 0.000000e+00 : f32
    %233 = vector.shape_cast %226 : vector<2x1xi1> to vector<2x1xi1>
    %234 = vector.broadcast %233 : vector<2x1xi1> to vector<2x32xi1>
    %235 = vector.broadcast %cst_82 : f32 to vector<2x32xf32>
    %236 = arith.select %234, %224, %235 : vector<2x32xi1>, vector<2x32xf32>
    %c0_83 = arith.constant 0 : index
    %237 = arith.index_cast %187 : i32 to index
    %c0_84 = arith.constant 0 : index
    %c0_85 = arith.constant 0 : index
    %238 = vector.load %arg5[%c0_83, %237, %c0_84, %c0_85] : memref<1x8x2x32xf32, #tpu.memory_space<vmem>>, vector<1x1x2x32xf32>
    %239 = vector.shape_cast %238 : vector<1x1x2x32xf32> to vector<2x32xf32>
    %240 = vector.shape_cast %236 : vector<2x32xf32> to vector<1x1x2x32xf32>
    tpu.vector_store %arg5[%c0_83, %237, %c0_84, %c0_85], %240 {strides = array<i32>} : memref<1x8x2x32xf32, #tpu.memory_space<vmem>>, vector<1x1x2x32xf32>,
    %c4_i32 = arith.constant 4 : i32
    %c2_i32_86 = arith.constant 2 : i32
    %241 = arith.muli %c2_i32_86, %c4_i32 : i32
    %c7_i32_87 = arith.constant 7 : i32
    %242 = arith.subi %c7_i32_87, %241 : i32
    %243 = arith.muli %arg0, %242 : i32
    %244 = arith.addi %c4_i32, %243 : i32
    %245 = arith.addi %10, %244 : i32
    %c0_88 = arith.constant 0 : index
    %246 = arith.index_cast %244 : i32 to index
    %c0_89 = arith.constant 0 : index
    %c0_90 = arith.constant 0 : index
    %247 = vector.load %arg3[%c0_88, %246, %c0_89, %c0_90] : memref<1x8x2x128xf32, #tpu.memory_space<vmem>>, vector<1x1x2x128xf32>
    %248 = vector.shape_cast %247 : vector<1x1x2x128xf32> to vector<2x128xf32>
    %cst_91 = arith.constant dense<0.000000e+00> : vector<2x128xf32>
    %249 = tpu.matmul %229, %5, %cst_91 {dimension_numbers = #tpu.dot_dimension_numbers<[1], [0], [0], [1], [0, 0, 1, 1], [], []>} : vector<2x32xf32>, vector<32x128xf32>, vector<2x128xf32> -> vector<2x128xf32>
    %250 = arith.addf %248, %249 : vector<2x128xf32>
    %251 = vector.extract_strided_slice %250 {offsets = [0, 0], sizes = [2, 32], strides = [1, 1]} : vector<2x128xf32> to vector<2x32xf32>
    %cst_92 = arith.constant 5.000000e-01 : f32
    %252 = vector.broadcast %cst_92 : f32 to vector<2x32xf32>
    %253 = arith.mulf %252, %251 : vector<2x32xf32>
    %254 = math.tanh %253 : vector<2x32xf32>
    %cst_93 = arith.constant 5.000000e-01 : f32
    %255 = vector.broadcast %cst_93 : f32 to vector<2x32xf32>
    %256 = arith.mulf %255, %254 : vector<2x32xf32>
    %cst_94 = arith.constant 5.000000e-01 : f32
    %257 = vector.broadcast %cst_94 : f32 to vector<2x32xf32>
    %258 = arith.addf %256, %257 : vector<2x32xf32>
    %259 = vector.extract_strided_slice %250 {offsets = [0, 32], sizes = [2, 32], strides = [1, 1]} : vector<2x128xf32> to vector<2x32xf32>
    %cst_95 = arith.constant 5.000000e-01 : f32
    %260 = vector.broadcast %cst_95 : f32 to vector<2x32xf32>
    %261 = arith.mulf %260, %259 : vector<2x32xf32>
    %262 = math.tanh %261 : vector<2x32xf32>
    %cst_96 = arith.constant 5.000000e-01 : f32
    %263 = vector.broadcast %cst_96 : f32 to vector<2x32xf32>
    %264 = arith.mulf %263, %262 : vector<2x32xf32>
    %cst_97 = arith.constant 5.000000e-01 : f32
    %265 = vector.broadcast %cst_97 : f32 to vector<2x32xf32>
    %266 = arith.addf %264, %265 : vector<2x32xf32>
    %267 = vector.extract_strided_slice %250 {offsets = [0, 64], sizes = [2, 32], strides = [1, 1]} : vector<2x128xf32> to vector<2x32xf32>
    %268 = math.tanh %267 : vector<2x32xf32>
    %269 = vector.extract_strided_slice %250 {offsets = [0, 96], sizes = [2, 32], strides = [1, 1]} : vector<2x128xf32> to vector<2x32xf32>
    %cst_98 = arith.constant 5.000000e-01 : f32
    %270 = vector.broadcast %cst_98 : f32 to vector<2x32xf32>
    %271 = arith.mulf %270, %269 : vector<2x32xf32>
    %272 = math.tanh %271 : vector<2x32xf32>
    %cst_99 = arith.constant 5.000000e-01 : f32
    %273 = vector.broadcast %cst_99 : f32 to vector<2x32xf32>
    %274 = arith.mulf %273, %272 : vector<2x32xf32>
    %cst_100 = arith.constant 5.000000e-01 : f32
    %275 = vector.broadcast %cst_100 : f32 to vector<2x32xf32>
    %276 = arith.addf %274, %275 : vector<2x32xf32>
    %277 = arith.mulf %266, %232 : vector<2x32xf32>
    %278 = arith.mulf %258, %268 : vector<2x32xf32>
    %279 = arith.addf %277, %278 : vector<2x32xf32>
    %280 = math.tanh %279 : vector<2x32xf32>
    %281 = arith.mulf %276, %280 : vector<2x32xf32>
    %282 = vector.broadcast %245 : i32 to vector<2x1xi32>
    %283 = arith.cmpi slt, %282, %3 : vector<2x1xi32>
    %284 = vector.shape_cast %283 : vector<2x1xi1> to vector<2x1xi1>
    %285 = vector.broadcast %284 : vector<2x1xi1> to vector<2x32xi1>
    %286 = arith.select %285, %281, %229 : vector<2x32xi1>, vector<2x32xf32>
    %287 = vector.shape_cast %283 : vector<2x1xi1> to vector<2x1xi1>
    %288 = vector.broadcast %287 : vector<2x1xi1> to vector<2x32xi1>
    %289 = arith.select %288, %279, %232 : vector<2x32xi1>, vector<2x32xf32>
    %cst_101 = arith.constant 0.000000e+00 : f32
    %290 = vector.shape_cast %283 : vector<2x1xi1> to vector<2x1xi1>
    %291 = vector.broadcast %290 : vector<2x1xi1> to vector<2x32xi1>
    %292 = vector.broadcast %cst_101 : f32 to vector<2x32xf32>
    %293 = arith.select %291, %281, %292 : vector<2x32xi1>, vector<2x32xf32>
    %c0_102 = arith.constant 0 : index
    %294 = arith.index_cast %244 : i32 to index
    %c0_103 = arith.constant 0 : index
    %c0_104 = arith.constant 0 : index
    %295 = vector.load %arg5[%c0_102, %294, %c0_103, %c0_104] : memref<1x8x2x32xf32, #tpu.memory_space<vmem>>, vector<1x1x2x32xf32>
    %296 = vector.shape_cast %295 : vector<1x1x2x32xf32> to vector<2x32xf32>
    %297 = vector.shape_cast %293 : vector<2x32xf32> to vector<1x1x2x32xf32>
    tpu.vector_store %arg5[%c0_102, %294, %c0_103, %c0_104], %297 {strides = array<i32>} : memref<1x8x2x32xf32, #tpu.memory_space<vmem>>, vector<1x1x2x32xf32>,
    %c5_i32 = arith.constant 5 : i32
    %c2_i32_105 = arith.constant 2 : i32
    %298 = arith.muli %c2_i32_105, %c5_i32 : i32
    %c7_i32_106 = arith.constant 7 : i32
    %299 = arith.subi %c7_i32_106, %298 : i32
    %300 = arith.muli %arg0, %299 : i32
    %301 = arith.addi %c5_i32, %300 : i32
    %302 = arith.addi %10, %301 : i32
    %c0_107 = arith.constant 0 : index
    %303 = arith.index_cast %301 : i32 to index
    %c0_108 = arith.constant 0 : index
    %c0_109 = arith.constant 0 : index
    %304 = vector.load %arg3[%c0_107, %303, %c0_108, %c0_109] : memref<1x8x2x128xf32, #tpu.memory_space<vmem>>, vector<1x1x2x128xf32>
    %305 = vector.shape_cast %304 : vector<1x1x2x128xf32> to vector<2x128xf32>
    %cst_110 = arith.constant dense<0.000000e+00> : vector<2x128xf32>
    %306 = tpu.matmul %286, %5, %cst_110 {dimension_numbers = #tpu.dot_dimension_numbers<[1], [0], [0], [1], [0, 0, 1, 1], [], []>} : vector<2x32xf32>, vector<32x128xf32>, vector<2x128xf32> -> vector<2x128xf32>
    %307 = arith.addf %305, %306 : vector<2x128xf32>
    %308 = vector.extract_strided_slice %307 {offsets = [0, 0], sizes = [2, 32], strides = [1, 1]} : vector<2x128xf32> to vector<2x32xf32>
    %cst_111 = arith.constant 5.000000e-01 : f32
    %309 = vector.broadcast %cst_111 : f32 to vector<2x32xf32>
    %310 = arith.mulf %309, %308 : vector<2x32xf32>
    %311 = math.tanh %310 : vector<2x32xf32>
    %cst_112 = arith.constant 5.000000e-01 : f32
    %312 = vector.broadcast %cst_112 : f32 to vector<2x32xf32>
    %313 = arith.mulf %312, %311 : vector<2x32xf32>
    %cst_113 = arith.constant 5.000000e-01 : f32
    %314 = vector.broadcast %cst_113 : f32 to vector<2x32xf32>
    %315 = arith.addf %313, %314 : vector<2x32xf32>
    %316 = vector.extract_strided_slice %307 {offsets = [0, 32], sizes = [2, 32], strides = [1, 1]} : vector<2x128xf32> to vector<2x32xf32>
    %cst_114 = arith.constant 5.000000e-01 : f32
    %317 = vector.broadcast %cst_114 : f32 to vector<2x32xf32>
    %318 = arith.mulf %317, %316 : vector<2x32xf32>
    %319 = math.tanh %318 : vector<2x32xf32>
    %cst_115 = arith.constant 5.000000e-01 : f32
    %320 = vector.broadcast %cst_115 : f32 to vector<2x32xf32>
    %321 = arith.mulf %320, %319 : vector<2x32xf32>
    %cst_116 = arith.constant 5.000000e-01 : f32
    %322 = vector.broadcast %cst_116 : f32 to vector<2x32xf32>
    %323 = arith.addf %321, %322 : vector<2x32xf32>
    %324 = vector.extract_strided_slice %307 {offsets = [0, 64], sizes = [2, 32], strides = [1, 1]} : vector<2x128xf32> to vector<2x32xf32>
    %325 = math.tanh %324 : vector<2x32xf32>
    %326 = vector.extract_strided_slice %307 {offsets = [0, 96], sizes = [2, 32], strides = [1, 1]} : vector<2x128xf32> to vector<2x32xf32>
    %cst_117 = arith.constant 5.000000e-01 : f32
    %327 = vector.broadcast %cst_117 : f32 to vector<2x32xf32>
    %328 = arith.mulf %327, %326 : vector<2x32xf32>
    %329 = math.tanh %328 : vector<2x32xf32>
    %cst_118 = arith.constant 5.000000e-01 : f32
    %330 = vector.broadcast %cst_118 : f32 to vector<2x32xf32>
    %331 = arith.mulf %330, %329 : vector<2x32xf32>
    %cst_119 = arith.constant 5.000000e-01 : f32
    %332 = vector.broadcast %cst_119 : f32 to vector<2x32xf32>
    %333 = arith.addf %331, %332 : vector<2x32xf32>
    %334 = arith.mulf %323, %289 : vector<2x32xf32>
    %335 = arith.mulf %315, %325 : vector<2x32xf32>
    %336 = arith.addf %334, %335 : vector<2x32xf32>
    %337 = math.tanh %336 : vector<2x32xf32>
    %338 = arith.mulf %333, %337 : vector<2x32xf32>
    %339 = vector.broadcast %302 : i32 to vector<2x1xi32>
    %340 = arith.cmpi slt, %339, %3 : vector<2x1xi32>
    %341 = vector.shape_cast %340 : vector<2x1xi1> to vector<2x1xi1>
    %342 = vector.broadcast %341 : vector<2x1xi1> to vector<2x32xi1>
    %343 = arith.select %342, %338, %286 : vector<2x32xi1>, vector<2x32xf32>
    %344 = vector.shape_cast %340 : vector<2x1xi1> to vector<2x1xi1>
    %345 = vector.broadcast %344 : vector<2x1xi1> to vector<2x32xi1>
    %346 = arith.select %345, %336, %289 : vector<2x32xi1>, vector<2x32xf32>
    %cst_120 = arith.constant 0.000000e+00 : f32
    %347 = vector.shape_cast %340 : vector<2x1xi1> to vector<2x1xi1>
    %348 = vector.broadcast %347 : vector<2x1xi1> to vector<2x32xi1>
    %349 = vector.broadcast %cst_120 : f32 to vector<2x32xf32>
    %350 = arith.select %348, %338, %349 : vector<2x32xi1>, vector<2x32xf32>
    %c0_121 = arith.constant 0 : index
    %351 = arith.index_cast %301 : i32 to index
    %c0_122 = arith.constant 0 : index
    %c0_123 = arith.constant 0 : index
    %352 = vector.load %arg5[%c0_121, %351, %c0_122, %c0_123] : memref<1x8x2x32xf32, #tpu.memory_space<vmem>>, vector<1x1x2x32xf32>
    %353 = vector.shape_cast %352 : vector<1x1x2x32xf32> to vector<2x32xf32>
    %354 = vector.shape_cast %350 : vector<2x32xf32> to vector<1x1x2x32xf32>
    tpu.vector_store %arg5[%c0_121, %351, %c0_122, %c0_123], %354 {strides = array<i32>} : memref<1x8x2x32xf32, #tpu.memory_space<vmem>>, vector<1x1x2x32xf32>,
    %c6_i32 = arith.constant 6 : i32
    %c2_i32_124 = arith.constant 2 : i32
    %355 = arith.muli %c2_i32_124, %c6_i32 : i32
    %c7_i32_125 = arith.constant 7 : i32
    %356 = arith.subi %c7_i32_125, %355 : i32
    %357 = arith.muli %arg0, %356 : i32
    %358 = arith.addi %c6_i32, %357 : i32
    %359 = arith.addi %10, %358 : i32
    %c0_126 = arith.constant 0 : index
    %360 = arith.index_cast %358 : i32 to index
    %c0_127 = arith.constant 0 : index
    %c0_128 = arith.constant 0 : index
    %361 = vector.load %arg3[%c0_126, %360, %c0_127, %c0_128] : memref<1x8x2x128xf32, #tpu.memory_space<vmem>>, vector<1x1x2x128xf32>
    %362 = vector.shape_cast %361 : vector<1x1x2x128xf32> to vector<2x128xf32>
    %cst_129 = arith.constant dense<0.000000e+00> : vector<2x128xf32>
    %363 = tpu.matmul %343, %5, %cst_129 {dimension_numbers = #tpu.dot_dimension_numbers<[1], [0], [0], [1], [0, 0, 1, 1], [], []>} : vector<2x32xf32>, vector<32x128xf32>, vector<2x128xf32> -> vector<2x128xf32>
    %364 = arith.addf %362, %363 : vector<2x128xf32>
    %365 = vector.extract_strided_slice %364 {offsets = [0, 0], sizes = [2, 32], strides = [1, 1]} : vector<2x128xf32> to vector<2x32xf32>
    %cst_130 = arith.constant 5.000000e-01 : f32
    %366 = vector.broadcast %cst_130 : f32 to vector<2x32xf32>
    %367 = arith.mulf %366, %365 : vector<2x32xf32>
    %368 = math.tanh %367 : vector<2x32xf32>
    %cst_131 = arith.constant 5.000000e-01 : f32
    %369 = vector.broadcast %cst_131 : f32 to vector<2x32xf32>
    %370 = arith.mulf %369, %368 : vector<2x32xf32>
    %cst_132 = arith.constant 5.000000e-01 : f32
    %371 = vector.broadcast %cst_132 : f32 to vector<2x32xf32>
    %372 = arith.addf %370, %371 : vector<2x32xf32>
    %373 = vector.extract_strided_slice %364 {offsets = [0, 32], sizes = [2, 32], strides = [1, 1]} : vector<2x128xf32> to vector<2x32xf32>
    %cst_133 = arith.constant 5.000000e-01 : f32
    %374 = vector.broadcast %cst_133 : f32 to vector<2x32xf32>
    %375 = arith.mulf %374, %373 : vector<2x32xf32>
    %376 = math.tanh %375 : vector<2x32xf32>
    %cst_134 = arith.constant 5.000000e-01 : f32
    %377 = vector.broadcast %cst_134 : f32 to vector<2x32xf32>
    %378 = arith.mulf %377, %376 : vector<2x32xf32>
    %cst_135 = arith.constant 5.000000e-01 : f32
    %379 = vector.broadcast %cst_135 : f32 to vector<2x32xf32>
    %380 = arith.addf %378, %379 : vector<2x32xf32>
    %381 = vector.extract_strided_slice %364 {offsets = [0, 64], sizes = [2, 32], strides = [1, 1]} : vector<2x128xf32> to vector<2x32xf32>
    %382 = math.tanh %381 : vector<2x32xf32>
    %383 = vector.extract_strided_slice %364 {offsets = [0, 96], sizes = [2, 32], strides = [1, 1]} : vector<2x128xf32> to vector<2x32xf32>
    %cst_136 = arith.constant 5.000000e-01 : f32
    %384 = vector.broadcast %cst_136 : f32 to vector<2x32xf32>
    %385 = arith.mulf %384, %383 : vector<2x32xf32>
    %386 = math.tanh %385 : vector<2x32xf32>
    %cst_137 = arith.constant 5.000000e-01 : f32
    %387 = vector.broadcast %cst_137 : f32 to vector<2x32xf32>
    %388 = arith.mulf %387, %386 : vector<2x32xf32>
    %cst_138 = arith.constant 5.000000e-01 : f32
    %389 = vector.broadcast %cst_138 : f32 to vector<2x32xf32>
    %390 = arith.addf %388, %389 : vector<2x32xf32>
    %391 = arith.mulf %380, %346 : vector<2x32xf32>
    %392 = arith.mulf %372, %382 : vector<2x32xf32>
    %393 = arith.addf %391, %392 : vector<2x32xf32>
    %394 = math.tanh %393 : vector<2x32xf32>
    %395 = arith.mulf %390, %394 : vector<2x32xf32>
    %396 = vector.broadcast %359 : i32 to vector<2x1xi32>
    %397 = arith.cmpi slt, %396, %3 : vector<2x1xi32>
    %398 = vector.shape_cast %397 : vector<2x1xi1> to vector<2x1xi1>
    %399 = vector.broadcast %398 : vector<2x1xi1> to vector<2x32xi1>
    %400 = arith.select %399, %395, %343 : vector<2x32xi1>, vector<2x32xf32>
    %401 = vector.shape_cast %397 : vector<2x1xi1> to vector<2x1xi1>
    %402 = vector.broadcast %401 : vector<2x1xi1> to vector<2x32xi1>
    %403 = arith.select %402, %393, %346 : vector<2x32xi1>, vector<2x32xf32>
    %cst_139 = arith.constant 0.000000e+00 : f32
    %404 = vector.shape_cast %397 : vector<2x1xi1> to vector<2x1xi1>
    %405 = vector.broadcast %404 : vector<2x1xi1> to vector<2x32xi1>
    %406 = vector.broadcast %cst_139 : f32 to vector<2x32xf32>
    %407 = arith.select %405, %395, %406 : vector<2x32xi1>, vector<2x32xf32>
    %c0_140 = arith.constant 0 : index
    %408 = arith.index_cast %358 : i32 to index
    %c0_141 = arith.constant 0 : index
    %c0_142 = arith.constant 0 : index
    %409 = vector.load %arg5[%c0_140, %408, %c0_141, %c0_142] : memref<1x8x2x32xf32, #tpu.memory_space<vmem>>, vector<1x1x2x32xf32>
    %410 = vector.shape_cast %409 : vector<1x1x2x32xf32> to vector<2x32xf32>
    %411 = vector.shape_cast %407 : vector<2x32xf32> to vector<1x1x2x32xf32>
    tpu.vector_store %arg5[%c0_140, %408, %c0_141, %c0_142], %411 {strides = array<i32>} : memref<1x8x2x32xf32, #tpu.memory_space<vmem>>, vector<1x1x2x32xf32>,
    %c7_i32_143 = arith.constant 7 : i32
    %c2_i32_144 = arith.constant 2 : i32
    %412 = arith.muli %c2_i32_144, %c7_i32_143 : i32
    %c7_i32_145 = arith.constant 7 : i32
    %413 = arith.subi %c7_i32_145, %412 : i32
    %414 = arith.muli %arg0, %413 : i32
    %415 = arith.addi %c7_i32_143, %414 : i32
    %416 = arith.addi %10, %415 : i32
    %c0_146 = arith.constant 0 : index
    %417 = arith.index_cast %415 : i32 to index
    %c0_147 = arith.constant 0 : index
    %c0_148 = arith.constant 0 : index
    %418 = vector.load %arg3[%c0_146, %417, %c0_147, %c0_148] : memref<1x8x2x128xf32, #tpu.memory_space<vmem>>, vector<1x1x2x128xf32>
    %419 = vector.shape_cast %418 : vector<1x1x2x128xf32> to vector<2x128xf32>
    %cst_149 = arith.constant dense<0.000000e+00> : vector<2x128xf32>
    %420 = tpu.matmul %400, %5, %cst_149 {dimension_numbers = #tpu.dot_dimension_numbers<[1], [0], [0], [1], [0, 0, 1, 1], [], []>} : vector<2x32xf32>, vector<32x128xf32>, vector<2x128xf32> -> vector<2x128xf32>
    %421 = arith.addf %419, %420 : vector<2x128xf32>
    %422 = vector.extract_strided_slice %421 {offsets = [0, 0], sizes = [2, 32], strides = [1, 1]} : vector<2x128xf32> to vector<2x32xf32>
    %cst_150 = arith.constant 5.000000e-01 : f32
    %423 = vector.broadcast %cst_150 : f32 to vector<2x32xf32>
    %424 = arith.mulf %423, %422 : vector<2x32xf32>
    %425 = math.tanh %424 : vector<2x32xf32>
    %cst_151 = arith.constant 5.000000e-01 : f32
    %426 = vector.broadcast %cst_151 : f32 to vector<2x32xf32>
    %427 = arith.mulf %426, %425 : vector<2x32xf32>
    %cst_152 = arith.constant 5.000000e-01 : f32
    %428 = vector.broadcast %cst_152 : f32 to vector<2x32xf32>
    %429 = arith.addf %427, %428 : vector<2x32xf32>
    %430 = vector.extract_strided_slice %421 {offsets = [0, 32], sizes = [2, 32], strides = [1, 1]} : vector<2x128xf32> to vector<2x32xf32>
    %cst_153 = arith.constant 5.000000e-01 : f32
    %431 = vector.broadcast %cst_153 : f32 to vector<2x32xf32>
    %432 = arith.mulf %431, %430 : vector<2x32xf32>
    %433 = math.tanh %432 : vector<2x32xf32>
    %cst_154 = arith.constant 5.000000e-01 : f32
    %434 = vector.broadcast %cst_154 : f32 to vector<2x32xf32>
    %435 = arith.mulf %434, %433 : vector<2x32xf32>
    %cst_155 = arith.constant 5.000000e-01 : f32
    %436 = vector.broadcast %cst_155 : f32 to vector<2x32xf32>
    %437 = arith.addf %435, %436 : vector<2x32xf32>
    %438 = vector.extract_strided_slice %421 {offsets = [0, 64], sizes = [2, 32], strides = [1, 1]} : vector<2x128xf32> to vector<2x32xf32>
    %439 = math.tanh %438 : vector<2x32xf32>
    %440 = vector.extract_strided_slice %421 {offsets = [0, 96], sizes = [2, 32], strides = [1, 1]} : vector<2x128xf32> to vector<2x32xf32>
    %cst_156 = arith.constant 5.000000e-01 : f32
    %441 = vector.broadcast %cst_156 : f32 to vector<2x32xf32>
    %442 = arith.mulf %441, %440 : vector<2x32xf32>
    %443 = math.tanh %442 : vector<2x32xf32>
    %cst_157 = arith.constant 5.000000e-01 : f32
    %444 = vector.broadcast %cst_157 : f32 to vector<2x32xf32>
    %445 = arith.mulf %444, %443 : vector<2x32xf32>
    %cst_158 = arith.constant 5.000000e-01 : f32
    %446 = vector.broadcast %cst_158 : f32 to vector<2x32xf32>
    %447 = arith.addf %445, %446 : vector<2x32xf32>
    %448 = arith.mulf %437, %403 : vector<2x32xf32>
    %449 = arith.mulf %429, %439 : vector<2x32xf32>
    %450 = arith.addf %448, %449 : vector<2x32xf32>
    %451 = math.tanh %450 : vector<2x32xf32>
    %452 = arith.mulf %447, %451 : vector<2x32xf32>
    %453 = vector.broadcast %416 : i32 to vector<2x1xi32>
    %454 = arith.cmpi slt, %453, %3 : vector<2x1xi32>
    %455 = vector.shape_cast %454 : vector<2x1xi1> to vector<2x1xi1>
    %456 = vector.broadcast %455 : vector<2x1xi1> to vector<2x32xi1>
    %457 = arith.select %456, %452, %400 : vector<2x32xi1>, vector<2x32xf32>
    %458 = vector.shape_cast %454 : vector<2x1xi1> to vector<2x1xi1>
    %459 = vector.broadcast %458 : vector<2x1xi1> to vector<2x32xi1>
    %460 = arith.select %459, %450, %403 : vector<2x32xi1>, vector<2x32xf32>
    %cst_159 = arith.constant 0.000000e+00 : f32
    %461 = vector.shape_cast %454 : vector<2x1xi1> to vector<2x1xi1>
    %462 = vector.broadcast %461 : vector<2x1xi1> to vector<2x32xi1>
    %463 = vector.broadcast %cst_159 : f32 to vector<2x32xf32>
    %464 = arith.select %462, %452, %463 : vector<2x32xi1>, vector<2x32xf32>
    %c0_160 = arith.constant 0 : index
    %465 = arith.index_cast %415 : i32 to index
    %c0_161 = arith.constant 0 : index
    %c0_162 = arith.constant 0 : index
    %466 = vector.load %arg5[%c0_160, %465, %c0_161, %c0_162] : memref<1x8x2x32xf32, #tpu.memory_space<vmem>>, vector<1x1x2x32xf32>
    %467 = vector.shape_cast %466 : vector<1x1x2x32xf32> to vector<2x32xf32>
    %468 = vector.shape_cast %464 : vector<2x32xf32> to vector<1x1x2x32xf32>
    tpu.vector_store %arg5[%c0_160, %465, %c0_161, %c0_162], %468 {strides = array<i32>} : memref<1x8x2x32xf32, #tpu.memory_space<vmem>>, vector<1x1x2x32xf32>,
    %c8_i32_163 = arith.constant 8 : i32
    %c0_164 = arith.constant 0 : index
    %c0_165 = arith.constant 0 : index
    %469 = vector.load %arg8[%c0_164, %c0_165] : memref<2x32xf32, #tpu.memory_space<vmem>>, vector<2x32xf32>
    tpu.vector_store %arg8[%c0_164, %c0_165], %457 {strides = array<i32>} : memref<2x32xf32, #tpu.memory_space<vmem>>, vector<2x32xf32>,
    %c0_166 = arith.constant 0 : index
    %c0_167 = arith.constant 0 : index
    %470 = vector.load %arg9[%c0_166, %c0_167] : memref<2x32xf32, #tpu.memory_space<vmem>>, vector<2x32xf32>
    tpu.vector_store %arg9[%c0_166, %c0_167], %460 {strides = array<i32>} : memref<2x32xf32, #tpu.memory_space<vmem>>, vector<2x32xf32>,
    %c0_168 = arith.constant 0 : index
    %c0_169 = arith.constant 0 : index
    %c0_170 = arith.constant 0 : index
    %471 = vector.load %arg6[%c0_168, %c0_169, %c0_170] : memref<1x2x32xf32, #tpu.memory_space<vmem>>, vector<1x2x32xf32>
    %472 = vector.shape_cast %471 : vector<1x2x32xf32> to vector<2x32xf32>
    %473 = vector.shape_cast %457 : vector<2x32xf32> to vector<1x2x32xf32>
    tpu.vector_store %arg6[%c0_168, %c0_169, %c0_170], %473 {strides = array<i32>} : memref<1x2x32xf32, #tpu.memory_space<vmem>>, vector<1x2x32xf32>,
    %c0_171 = arith.constant 0 : index
    %c0_172 = arith.constant 0 : index
    %c0_173 = arith.constant 0 : index
    %474 = vector.load %arg7[%c0_171, %c0_172, %c0_173] : memref<1x2x32xf32, #tpu.memory_space<vmem>>, vector<1x2x32xf32>
    %475 = vector.shape_cast %474 : vector<1x2x32xf32> to vector<2x32xf32>
    %476 = vector.shape_cast %460 : vector<2x32xf32> to vector<1x2x32xf32>
    tpu.vector_store %arg7[%c0_171, %c0_172, %c0_173], %476 {strides = array<i32>} : memref<1x2x32xf32, #tpu.memory_space<vmem>>, vector<1x2x32xf32>,
    return
  }
  func.func @transform_0(%arg0: i32, %arg1: i32) -> (i32, i32) {
    %c0_i32 = arith.constant 0 : i32
    %c0_i32_0 = arith.constant 0 : i32
    %c0_i32_1 = arith.constant 0 : i32
    return %c0_i32, %c0_i32_0 : i32, i32
  }
  func.func @transform_1(%arg0: i32, %arg1: i32) -> (i32, i32, i32, i32) {
    %c2_i32 = arith.constant 2 : i32
    %0 = arith.muli %c2_i32, %arg1 : i32
    %c0_i32 = arith.constant 0 : i32
    %1 = arith.subi %c0_i32, %0 : i32
    %2 = arith.muli %arg0, %1 : i32
    %3 = arith.addi %arg1, %2 : i32
    %c0_i32_0 = arith.constant 0 : i32
    %c0_i32_1 = arith.constant 0 : i32
    %c0_i32_2 = arith.constant 0 : i32
    return %arg0, %3, %c0_i32_0, %c0_i32_1 : i32, i32, i32, i32
  }
  func.func @transform_2(%arg0: i32, %arg1: i32) -> (i32, i32, i32) {
    %c0_i32 = arith.constant 0 : i32
    %c0_i32_0 = arith.constant 0 : i32
    %c0_i32_1 = arith.constant 0 : i32
    return %arg0, %c0_i32, %c0_i32_0 : i32, i32, i32
  }
  func.func @transform_3(%arg0: i32, %arg1: i32) -> (i32, i32, i32, i32) {
    %c2_i32 = arith.constant 2 : i32
    %0 = arith.muli %c2_i32, %arg1 : i32
    %c0_i32 = arith.constant 0 : i32
    %1 = arith.subi %c0_i32, %0 : i32
    %2 = arith.muli %arg0, %1 : i32
    %3 = arith.addi %arg1, %2 : i32
    %c0_i32_0 = arith.constant 0 : i32
    %c0_i32_1 = arith.constant 0 : i32
    %c0_i32_2 = arith.constant 0 : i32
    return %arg0, %3, %c0_i32_0, %c0_i32_1 : i32, i32, i32, i32
  }
  func.func @transform_4(%arg0: i32, %arg1: i32) -> (i32, i32, i32) {
    %c0_i32 = arith.constant 0 : i32
    %c0_i32_0 = arith.constant 0 : i32
    %c0_i32_1 = arith.constant 0 : i32
    return %arg0, %c0_i32, %c0_i32_0 : i32, i32, i32
  }
  func.func @transform_5(%arg0: i32, %arg1: i32) -> (i32, i32, i32) {
    %c0_i32 = arith.constant 0 : i32
    %c0_i32_0 = arith.constant 0 : i32
    %c0_i32_1 = arith.constant 0 : i32
    return %arg0, %c0_i32, %c0_i32_0 : i32, i32, i32
  }
}

</mosaic_0001>

<bundles_post_ra>
// kernel: tpu_custom_call.1
= control target key start
LH: loop header
LB: loop body
LE: loop exit
PB: predicated region body
PF: predicated region fallthrough
CT: control target
= control target key end

     0   :  { %s2126_s0 = inlined_call_operand.vmem [shape: s32[2,1], index: 0, kind: input, shape index: {}]   ;;  %s2127_s1 = inlined_call_operand.hbm [shape: f32[2,8,2,128], index: 1, kind: input, shape index: {}]   ;;  %s2128_s2 = inlined_call_operand.hbm [shape: f32[2,32,128], index: 2, kind: input, shape index: {}]   ;;  %s2129_s3 = inlined_call_operand.hbm [shape: f32[2,8,2,32], index: 3, kind: output, shape index: {0}]   ;;  %s2130_s4 = inlined_call_operand.hbm [shape: f32[2,2,32], index: 4, kind: output, shape index: {1}]   ;;  %s2131_s5 = inlined_call_operand.hbm [shape: f32[2,2,32], index: 5, kind: output, shape index: {2}]  }
   0x1   :  { %2136 = sst [smem:[#allocation21_spill]] %s2126_s0 }
   0x2   :  { %2137 = sst [smem:[#allocation22_spill]] %s2127_s1 }
   0x3   :  { %11 = vsyncpa [#allocation5], 0 }
   0x4   :  { %13 = vsyncpa [#allocation5 + $0x1], 0 }
   0x5   :  { %14 = vsyncpa [#allocation8], 0 }
   0x6   :  { %16 = vsyncpa [#allocation8 + $0x1], 0 }
   0x7   :  { %17 = vsyncpa [#allocation6], 0 }
   0x8   :  { %19 = vsyncpa [#allocation6 + $0x1], 0 }
   0x9   :  { %20 = vsyncpa [#allocation11], 0 }
   0xa   :  { %22 = vsyncpa [#allocation11 + $0x1], 0  ;;  %s1685_s18 = smov 0   ;;  %s1687_s19 = smov 0  }
   0xb   :  { %s1689_s20 = smov 0   ;;  %s1691_s21 = smov 0  }
   0xc   :  { %s1693_s22 = smov 0   ;;  %s1695_s23 = smov 0  }
   0xd LB: > { %2138 = sst [smem:[#allocation17_spill]] %s1631_s20  ;;  %s1716_s24 = sadd.s32 4294967295, %s1643_s23   ;;  %s1643_s23 = sphi %s1695_s23, %s28_s23   ;;  %s1639_s22 = sphi %s1693_s22, %s2157_s22   ;;  %s1635_s21 = sphi %s1691_s21, %s2156_s21   ;;  %s1631_s20 = sphi %s1689_s20, %s2152_s20   ;;  %s1627_s19 = sphi %s1687_s19, %s2155_s19   ;;  %s1623_s18 = sphi %s1685_s18, %s2154_s18  }
   0xe   : > { %s2132_s25 = sadd.s32 4294967294, %s1643_s23   ;;  %s40_s26 = sadd.s32 1, %s1639_s22 }
   0xf   : > { %s78_s27 = sadd.s32 1, %s1631_s20  ;;  %p42_p0 = scmp.ge.s32.totalorder %s40_s26, 2 }
  0x10   : > { %p85_p1 = scmp.ne.s32.totalorder %s1631_s20, %s1627_s19  ;;  %p86_p2 = scmp.eq.s32.totalorder %s1643_s23, 0 }
  0x11   : > { %p91_p3 = scmp.ne.s32.totalorder %s1627_s19, %s1623_s18  ;;  %s2159_s26 = smov (%p42_p0, %s40_s26), 0 }
  0x12   : > { %2139 = sst [smem:[#allocation18_spill]] %s2159_s26  ;;  %p1728_p4 = por %p86_p2, %p85_p1 }
  0x13   : > { %p92_p5 = scmp.eq.s32.totalorder %s1716_s24, 0  ;;  %s73_s29 = ssub.s32 %s1639_s22, %s2159_s26 }
  0x14   : > { %p151_p6 = scmp.eq.s32.totalorder %s1716_s24, 1  ;;  %p76_p7 = scmp.eq.s32.totalorder %s73_s29, 0 }
  0x15   : > { %p1736_p8 = por %p92_p5, %p91_p3  ;;  %p157_p10 = scmp.eq.s32.totalorder %s2132_s25, 1 }
  0x16   : > { %p1740_p9 = por %p151_p6, %p85_p1  ;;  %p1240_p12 = scmp.ge.s32.totalorder %s1643_s23, 2 }
  0x17   : > { %s1747_s7 = scalar_select %p76_p7, %s1631_s20, %s78_s27  }
  0x18   : > { %p1749_p11 = por %p157_p10, %p91_p3  ;;  %p1326_p13 = scmp.lt.s32.totalorder %s1643_s23, 2 }
  0x19   : > { %2143 = sst [smem:[#allocation19_spill]] %s1747_s7  ;;  %s1756_s9 = sand.u32 1, %s1631_s20  }
  0x1a   : > { %s2144_s8 = scalar_select %p1749_p11, 1, 0 }
  0x1b   : > { %s1241_s10 = sshll.u32 %s1756_s9, 4  ;;  %s1296_s11 = sshll.u32 %s1639_s22, 4 }
  0x1c   : > { %2145 = sst [smem:[#allocation20_spill]] %s2144_s8  ;;  %s236_s15 = scalar_lea.vmem [#allocation4], %s1241_s10 }
  0x1d   : > { %s2146_s1 = sld [smem:[#allocation22_spill]]  ;;  %s250_s16 = sshll.u32 %s236_s15, 4  ;;  %s251_s16 = int_to_ptr.vmem [resolvable:$true] %s250_s16 }
  0x1e   : > { %p1765_p0 = pnand %p1326_p13, %p1728_p4  ;;  %p1247_p1 = scmp.ge.s32.totalorder %s1643_s23, 1 }
  0x1f   : > { %s233_s29 = scalar_lea.sflag [#allocation5], %s1756_s9  ;;  %s1645_s25 = smov 32  }
  0x20   : > { %s1646_s26 = smov 2   ;;  %p280_p2 = scmp.lt.s32.totalorder %s1643_s23, 3 }
  0x21   : > { %s1244_s10 = sshll.u32 %s1756_s9, 5  ;;  %s261_s7 = scalar_lea.sflag [#allocation8], %s1756_s9 }
  0x22   : > { %p281_p3 = pnand %p1247_p1, %p280_p2  ;;  %s1647_s20 = smov 128  }
  0x23   : > { %s247_s14 = scalar_lea.hbm %s2146_s1, %s1296_s11  ;;  %s1297_s11 = sshll.u32 %s1639_s22, 5 }
  0x24   : > { %s248_s17 = sshll.u32 %s247_s14, 4  ;;  %s269_s28 = scalar_lea.hbm %s2128_s2, %s1297_s11  ;;  %s249_s17 = int_to_ptr.hbm [resolvable:$true] %s248_s17 }
  0x25   : > { %1312 = dma.hbm_to_vmem [thread:$0]  (!%p1765_p0), %s249_s17, 256, %s251_s16, %s233_s29, %s1645_s25, %s1645_s25, %s1646_s26  }
  0x26   : > { %s264_s14 = scalar_lea.vmem [#allocation7], %s1244_s10  ;;  %s270_s1 = sshll.u32 %s269_s28, 4  ;;  %s271_s1 = int_to_ptr.hbm [resolvable:$true] %s270_s1 }
  0x27   : > { %s272_s15 = sshll.u32 %s264_s14, 4  ;;  %s1648_s8 = smov 8   ;;  %s273_s15 = int_to_ptr.vmem [resolvable:$true] %s272_s15 }
  0x28   : > { %1315 = dma.hbm_to_vmem [thread:$0]  (!%p1765_p0), %s271_s1, 512, %s273_s15, %s261_s7, %s1647_s20, %s1647_s20, %s1648_s8  }
  0x29   : > { %284 = sbr.rel (%p281_p3) target bundleno = 4731 (0x127b), region = 32  ;;  %s1783_s25 = sand.u32 (!%p281_p3), 1, %s1627_s19  }
  0x2a   : > { %s1248_s26 = sshll.u32 (!%p281_p3), %s1783_s25, 4  ;;  %s287_s16 = scalar_lea.sflag (!%p281_p3), [#allocation5], %s1783_s25 }
  0x2b   : > { %s1789_s17 = scalar_lea.vmem (!%p281_p3), [#allocation4], %s1248_s26 }
  0x2e   : > { %1606 = dma.done.wait (%p1736_p8), %s287_s16, 256  }
  0x2f   : > { %1608 = vsyncadd (%p1736_p8), %s287_s16, 4294967040  ;;  %s1249_s1 = sshll.u32 %s1783_s25, 5  ;;  %s297_s20 = scalar_lea.sflag [#allocation8], %s1783_s25 }
  0x30   : > { %s300_s7 = scalar_lea.vmem [#allocation7], %s1249_s1 }
  0x31   : > { %1610 = dma.done.wait (%p1736_p8), %s297_s20, 512  }
  0x32   : > { %1612 = vsyncadd (%p1736_p8), %s297_s20, 4294966784  ;;  %vm357_vm0 = vcmask 254976   ;;  %v1649_v0 = vmov 0.0   ;;  %v364_v1 = vld [vmem:[%s300_s7 + $0x18] sm:$0xff]  ;;  %v363_v2 = vld [vmem:[%s300_s7 + $0x10] sm:$0xff]  ;;  %vm377_vm1 = vcmask 261120  }
  0x33   : > { %358 = vst.msk [vmem:[#allocation2] sm:$0x3] %vm357_vm0, %v1649_v0  ;;  %393 = vmatpush.msra.mxu0 %v364_v1  ;;  %471 = vmatpush.msra.mxu1 %v364_v1  ;;  %v362_v3 = vld [vmem:[%s300_s7 + $0x8] sm:$0xff]  ;;  %v361_v4 = vld [vmem:[%s300_s7] sm:$0xff]  ;;  %s1253_s30 = smul.u32 14, %s1635_s21  ;;  %s1650_s9 = smov 64  }
  0x34   : > { %359 = vst.msk [vmem:[#allocation3] sm:$0x3] %vm357_vm0, %v1649_v0  ;;  %541 = vmatpush.msra.mxu2 %v364_v1  ;;  %610 = vmatpush.msra.mxu3 %v364_v1  ;;  %s1651_s27 = smov 32   ;;  %s372_s29 = smul.u32 7, %s1635_s21  ;;  %v1652_v13 = vmov 0  }
  0x35   : > { %394 = vmatpush.msra.mxu0 %v363_v2  ;;  %472 = vmatpush.msra.mxu1 %v363_v2  ;;  %s375_s8 = scalar_lea.vmem %s1789_s17, %s1253_s30 [#allocation4]  ;;  %s2148_s0 = sld [smem:[#allocation21_spill]] }
  0x36   : > { %542 = vmatpush.msra.mxu2 %v363_v2  ;;  %611 = vmatpush.msra.mxu3 %v363_v2  ;;  %v376_v6 = vld [vmem:[%s375_s8] sm:$0x3]  ;;  %v428_v12 = vstv %s372_s29  ;;  %s1653_s12 = smov 96   ;;  %s1255_s13 = smul.u32 10, %s1635_s21 }
  0x37   : > { %395 = vmatpush.msra.mxu0 %v362_v3  ;;  %473 = vmatpush.msra.mxu1 %v362_v3  ;;  %s448_s14 = smul.u32 5, %s1635_s21  ;;  %s588_s8 = sadd.s32 3, %s1635_s21 }
  0x38   : > { %543 = vmatpush.msra.mxu2 %v362_v3  ;;  %612 = vmatpush.msra.mxu3 %v362_v3  ;;  %s1102_s28 = scalar_lea.vmem %s1789_s17, %s1255_s13 [#allocation4]  ;;  %s1260_s16 = smul.u32 6, %s1635_s21  ;;  %v641_v60 = vstv %s588_s8 }
  0x39   : > { %396 = vmatpush.msra.mxu0 %v361_v4  ;;  %474 = vmatpush.msra.mxu1 %v361_v4  ;;  %v1256_v32 = vld [vmem:[%s1102_s28 + $0x2] sm:$0x3]  ;;  %s449_s15 = sadd.s32 1, %s448_s14  ;;  %s518_s20 = smul.u32 3, %s1635_s21 }
  0x3a   : > { %v370_v5 = vld [vmem:[#allocation2] sm:$0x3]  ;;  %544 = vmatpush.msra.mxu2 %v361_v4  ;;  %613 = vmatpush.msra.mxu3 %v361_v4  ;;  %v502_v36 = vstv %s449_s15  ;;  %s1110_s1 = scalar_lea.vmem %s1789_s17, %s1260_s16 [#allocation4]  ;;  %s1882_s29 = sshll.u32 %s1635_s21, 1 }
  0x3b   : > { %1254 = vmatmul.msk.f32.vlgmr.msra.gmra.mxu0 %vm377_vm1, %v370_v5  ;;  %749 = vmatpush.msrb.mxu1 %v364_v1  ;;  %v371_v10 = vld [vmem:[#allocation3] sm:$0x3]  ;;  %v1814_v11 = vld [vmem:[%s2148_s0] sm:$0x3]  ;;  %v1261_v54 = vld [vmem:[%s1110_s1 + $0x4] sm:$0x3]  ;;  %s1117_s10 = scalar_lea.vmem %s1789_s17, %s1882_s29 [#allocation4] }
  0x3c   : > { %679 = vmatpush.msrb.mxu0 %v364_v1  ;;  %819 = vmatpush.msrb.mxu2 %v364_v1  ;;  %vm429_vm2 = vcmp.lt.s32.totalorder %v428_v12, %v1814_v11  ;;  %vm503_vm4 = vcmp.lt.s32.totalorder %v502_v36, %v1814_v11  ;;  %s519_s7 = sadd.s32 2, %s518_s20  ;;  %vm642_vm7 = vcmp.lt.s32.totalorder %v641_v60, %v1814_v11  ;;  %s657_s11 = ssub.s32 4, %s1635_s21 }
  0x3d   : > { %889 = vmatpush.msrb.mxu3 %v364_v1  ;;  %750 = vmatpush.msrb.mxu1 %v363_v2  ;;  %v430_v14 = vsel %vm429_vm2, 1, %v1652_v13  ;;  %v504_v37 = vsel %vm503_vm4, 1, %v1652_v13  ;;  %v572_v58 = vstv %s519_s7  ;;  %v643_v61 = vsel %vm642_vm7, 1, %v1652_v13  ;;  %s1902_s28 = sshll.u32 %s657_s11, 1  ;;  %s1272_s15 = smul.u32 4294967290, %s1635_s21 }
  0x3e   : > { %680 = vmatpush.msrb.mxu0 %v363_v2  ;;  %820 = vmatpush.msrb.mxu2 %v363_v2  ;;  %vm573_vm6 = vcmp.lt.s32.totalorder %v572_v58, %v1814_v11  ;;  %s660_s14 = scalar_lea.vmem %s1789_s17, %s1902_s28 [#allocation4]  ;;  %s726_s20 = smul.u32 4294967293, %s1635_s21 }
  0x3f   : > { %890 = vmatpush.msrb.mxu3 %v363_v2  ;;  %751 = vmatpush.msrb.mxu1 %v362_v3  ;;  %v574_v59 = vsel %vm573_vm6, 1, %v1652_v13  ;;  %s1128_s1 = scalar_lea.vmem %s1789_s17, %s1272_s15 [#allocation4]  ;;  %s1277_s8 = smul.u32 4294967286, %s1635_s21 }
  0x40   : > { %681 = vmatpush.msrb.mxu0 %v362_v3  ;;  %821 = vmatpush.msrb.mxu2 %v362_v3  ;;  %s727_s7 = sadd.s32 5, %s726_s20 }
  0x41   : > { %891 = vmatpush.msrb.mxu3 %v362_v3  ;;  %752 = vmatpush.msrb.mxu1 %v361_v4 }
  0x42   : > { %682 = vmatpush.msrb.mxu0 %v361_v4  ;;  %822 = vmatpush.msrb.mxu2 %v361_v4 }
  0x43   : > { %892 = vmatpush.msrb.mxu3 %v361_v4  ;;  %1386 = vset.pattern.permute.xlu2 %v1652_v13 }
  0x44   : > { %1387 = vset.pattern.permute.xlu1 %v1652_v13  ;;  %1388 = vset.pattern.permute.xlu0 %v1652_v13 }
  0x45   : > { %432 = vperm.xlu2 %1386, %v430_v14  }
  0x4d   : > { %435 = vrot.lane.b32.xlu2 %v370_v5, %s1653_s12 }
  0x9f   : > { %v1824_v26 = vpop.permute.xlu2 %432 }
  0xa0   : > { %vm434_vm3 = vcmp.eq.s32.totalorder %v1824_v26, 1 }
  0xa7   : > { %v436_v28 = vpop.permute.xlu2 %435 }
  0xb8   : > { %v398_v7 = vpop.f32.mrf.mxu0 }
  0xb9   : > { %v401_v8 = vadd.f32 %v398_v7, %v376_v6 }
  0xbb   : > { %1389 = vtanh.f32 %v401_v8  ;;  %v402_v15 = vmul.f32 0.5, %v401_v8 }
  0xbd   : > { %1391 = vtanh.f32 %v402_v15 }
  0xc1   : > { %v1390_v9 = vpop.eup %1389 }
  0xc2   : > { %413 = vrot.lane.b32.xlu0 %v1390_v9, %s1650_s9 }
  0xc3   : > { %v1392_v16 = vpop.eup %1391 }
  0xc4   : > { %v404_v17 = vmul.f32 0.5, %v1392_v16  ;;  %v1266_v16 = vld [vmem:[%s1117_s10 + $0x6] sm:$0x3]  ;;  %s1136_s10 = scalar_lea.vmem %s1789_s17, %s1277_s8 [#allocation4] }
  0xc6   : > { %v405_v18 = vadd.f32 0.5, %v404_v17 }
  0xca   : > { %408 = vrot.lane.b32.xlu0 %v371_v10, %s1651_s27 }
 0x134   : > { %v414_v19 = vpop.permute.xlu0 %413 }
 0x135   : > { %v416_v20 = vmul.f32 %v414_v19, %v405_v18 }
 0x137   : > { %418 = vrot.lane.b32.xlu1 %v416_v20, %s1651_s27 }
 0x13c   : > { %v409_v21 = vpop.permute.xlu0 %408 }
 0x13d   : > { %v411_v22 = vmul.f32 %v409_v21, %v405_v18 }
 0x1a9   : > { %v419_v23 = vpop.permute.xlu1 %418 }
 0x1aa   : > { %v421_v24 = vadd.f32 %v419_v23, %v411_v22 }
 0x1ac   : > { %1393 = vtanh.f32 %v421_v24  ;;  %v439_v44 = vsel %vm434_vm3, %v421_v24, %v409_v21 }
 0x1b2   : > { %v1394_v25 = vpop.eup %1393 }
 0x1b3   : > { %424 = vrot.lane.b32.xlu1 %v1394_v25, %s1650_s9 }
 0x225   : > { %v425_v27 = vpop.permute.xlu1 %424 }
 0x226   : > { %v1826_v29 = vmul.f32 %v425_v27, %v405_v18 }
 0x228   : > { %v438_v30 = vsel %vm434_vm3, %v1826_v29, %v436_v28 }
 0x229   : > { %455 = vrot.lane.b32.xlu0 %v438_v30, %s1651_s27 }
 0x29b   : > { %v456_v31 = vpop.permute.xlu0 %455 }
 0x29c   : > { %1257 = vmatmul.msk.f32.vlgmr.msra.gmra.mxu1 %vm377_vm1, %v456_v31 }
 0x319   : > { %v476_v33 = vpop.f32.mrf.mxu1 }
 0x31a   : > { %v479_v34 = vadd.f32 %v1256_v32, %v476_v33 }
 0x31c   : > { %1395 = vtanh.f32 %v479_v34  ;;  %v480_v38 = vmul.f32 0.5, %v479_v34 }
 0x31e   : > { %1397 = vtanh.f32 %v480_v38  ;;  %v661_v38 = vld [vmem:[%s660_s14] sm:$0x3] }
 0x322   : > { %v1396_v35 = vpop.eup %1395 }
 0x323   : > { %487 = vrot.lane.b32.xlu1 %v1396_v35, %s1650_s9 }
 0x324   : > { %v1398_v39 = vpop.eup %1397 }
 0x325   : > { %v482_v40 = vmul.f32 0.5, %v1398_v39 }
 0x327   : > { %v483_v41 = vadd.f32 0.5, %v482_v40 }
 0x329   : > { %v485_v45 = vmul.f32 %v483_v41, %v439_v44 }
 0x32b   : > { %506 = vperm.xlu1 %1387, %v504_v37  }
 0x395   : > { %v488_v42 = vpop.permute.xlu1 %487 }
 0x396   : > { %v490_v43 = vmul.f32 %v488_v42, %v483_v41  ;;  %v710_v42 = vstv %s657_s11  ;;  %s796_s11 = smul.u32 4294967291, %s1635_s21 }
 0x397   : > { %vm711_vm10 = vcmp.lt.s32.totalorder %v710_v42, %v1814_v11 }
 0x398   : > { %492 = vrot.lane.b32.xlu2 %v490_v43, %s1651_s27  ;;  %v712_v43 = vsel %vm711_vm10, 1, %v1652_v13  ;;  %s797_s14 = sadd.s32 6, %s796_s11 }
 0x39d   : > { %v1846_v49 = vpop.permute.xlu1 %506 }
 0x39e   : > { %vm508_vm5 = vcmp.eq.s32.totalorder %v1846_v49, 1 }
 0x3f2   : > { %v493_v46 = vpop.permute.xlu2 %492 }
 0x3f3   : > { %v495_v47 = vadd.f32 %v493_v46, %v485_v45 }
 0x3f5   : > { %1399 = vtanh.f32 %v495_v47  ;;  %v510_v4 = vsel %vm508_vm5, %v495_v47, %v439_v44 }
 0x3fb   : > { %v1400_v48 = vpop.eup %1399 }
 0x3fc   : > { %498 = vrot.lane.b32.xlu0 %v1400_v48, %s1650_s9 }
 0x46e   : > { %v499_v50 = vpop.permute.xlu0 %498 }
 0x46f   : > { %v1848_v51 = vmul.f32 %v499_v50, %v483_v41 }
 0x471   : > { %v509_v52 = vsel %vm508_vm5, %v1848_v51, %v438_v30 }
 0x472   : > { %525 = vrot.lane.b32.xlu2 %v509_v52, %s1651_s27 }
 0x4cc   : > { %v526_v53 = vpop.permute.xlu2 %525 }
 0x4cd   : > { %1262 = vmatmul.msk.f32.vlgmr.msra.gmra.mxu2 %vm377_vm1, %v526_v53 }
 0x550   : > { %v546_v55 = vpop.f32.mrf.mxu2 }
 0x551   : > { %v549_v56 = vadd.f32 %v1261_v54, %v546_v55 }
 0x553   : > { %1401 = vtanh.f32 %v549_v56  ;;  %v550_v62 = vmul.f32 0.5, %v549_v56 }
 0x555   : > { %1403 = vtanh.f32 %v550_v62  ;;  %v1273_v62 = vld [vmem:[%s1128_s1 + $0xa] sm:$0x3]  ;;  %s1282_s1 = smul.u32 4294967282, %s1635_s21 }
 0x557   : > { %s1144_s20 = scalar_lea.vmem %s1789_s17, %s1282_s1 [#allocation4]  ;;  %s1985_s17 = scalar_lea.vmem [#allocation9], %s1248_s26 }
 0x558   : > { %s445_s11 = scalar_lea.vmem %s1985_s17, %s1253_s30 [#allocation9]  ;;  %s1251_s26 = sshll.u32 %s1783_s25, 1 }
 0x559   : > { %v1402_v57 = vpop.eup %1401  ;;  %s2004_s30 = scalar_lea.vmem [#allocation12], %s1251_s26 }
 0x55a   : > { %557 = vrot.lane.b32.xlu0 %v1402_v57, %s1650_s9 }
 0x55b   : > { %v1404_v63 = vpop.eup %1403 }
 0x55c   : > { %v552_v0 = vmul.f32 0.5, %v1404_v63 }
 0x55e   : > { %v553_v1 = vadd.f32 0.5, %v552_v0 }
 0x560   : > { %v555_v5 = vmul.f32 %v553_v1, %v510_v4 }
 0x562   : > { %576 = vperm.xlu0 %1388, %v574_v59  }
 0x56a   : > { %645 = vperm.xlu0 %1388, %v643_v61  }
 0x5cc   : > { %v558_v2 = vpop.permute.xlu0 %557 }
 0x5cd   : > { %v560_v3 = vmul.f32 %v558_v2, %v553_v1  ;;  %v780_v2 = vstv %s727_s7  ;;  %s866_s7 = smul.u32 4294967289, %s1635_s21 }
 0x5ce   : > { %vm781_vm12 = vcmp.lt.s32.totalorder %v780_v2, %v1814_v11 }
 0x5cf   : > { %562 = vrot.lane.b32.xlu1 %v560_v3, %s1651_s27  ;;  %v782_v3 = vsel %vm781_vm12, 1, %v1652_v13 }
 0x5d4   : > { %v1871_v9 = vpop.permute.xlu0 %576 }
 0x5d5   : > { %vm578_vm8 = vcmp.eq.s32.totalorder %v1871_v9, 1 }
 0x5dc   : > { %v1891_v33 = vpop.permute.xlu0 %645 }
 0x5dd   : > { %vm647_vm9 = vcmp.eq.s32.totalorder %v1891_v33, 1 }
 0x641   : > { %v563_v6 = vpop.permute.xlu1 %562 }
 0x642   : > { %v565_v7 = vadd.f32 %v563_v6, %v555_v5 }
 0x644   : > { %1405 = vtanh.f32 %v565_v7  ;;  %v580_v27 = vsel %vm578_vm8, %v565_v7, %v510_v4 }
 0x64a   : > { %v1406_v8 = vpop.eup %1405 }
 0x64b   : > { %568 = vrot.lane.b32.xlu2 %v1406_v8, %s1650_s9 }
 0x6a5   : > { %v569_v10 = vpop.permute.xlu2 %568 }
 0x6a6   : > { %v1873_v12 = vmul.f32 %v569_v10, %v553_v1 }
 0x6a8   : > { %v579_v14 = vsel %vm578_vm8, %v1873_v12, %v509_v52 }
 0x6a9   : > { %594 = vrot.lane.b32.xlu1 %v579_v14, %s1651_s27 }
 0x71b   : > { %v595_v15 = vpop.permute.xlu1 %594 }
 0x71c   : > { %1267 = vmatmul.msk.f32.vlgmr.msra.gmra.mxu3 %vm377_vm1, %v595_v15 }
 0x79f   : > { %v615_v17 = vpop.f32.mrf.mxu3 }
 0x7a0   : > { %v618_v18 = vadd.f32 %v1266_v16, %v615_v17 }
 0x7a2   : > { %1407 = vtanh.f32 %v618_v18  ;;  %v619_v20 = vmul.f32 0.5, %v618_v18 }
 0x7a4   : > { %1409 = vtanh.f32 %v619_v20 }
 0x7a8   : > { %v1408_v19 = vpop.eup %1407 }
 0x7a9   : > { %626 = vrot.lane.b32.xlu2 %v1408_v19, %s1650_s9 }
 0x7aa   : > { %v1410_v21 = vpop.eup %1409 }
 0x7ab   : > { %v621_v22 = vmul.f32 0.5, %v1410_v21 }
 0x7ad   : > { %v622_v23 = vadd.f32 0.5, %v621_v22 }
 0x7af   : > { %v624_v28 = vmul.f32 %v622_v23, %v580_v27 }
 0x803   : > { %v627_v24 = vpop.permute.xlu2 %626 }
 0x804   : > { %v629_v25 = vmul.f32 %v627_v24, %v622_v23  ;;  %v1278_v24 = vld [vmem:[%s1136_s10 + $0xc] sm:$0x3]  ;;  %s867_s10 = sadd.s32 7, %s866_s7  ;;  %s1132_s7 = scalar_lea.vmem %s1985_s17, %s1272_s15 [#allocation9] }
 0x805   : > { %s1148_s15 = scalar_lea.vmem %s1985_s17, %s1282_s1 [#allocation9] }
 0x806   : > { %631 = vrot.lane.b32.xlu1 %v629_v25, %s1651_s27 }
 0x878   : > { %v632_v30 = vpop.permute.xlu1 %631 }
 0x879   : > { %v634_v31 = vadd.f32 %v632_v30, %v624_v28  ;;  %v850_v30 = vstv %s797_s14  ;;  %s1120_s14 = scalar_lea.vmem %s1985_s17, %s1882_s29 [#allocation9] }
 0x87a   : > { %vm851_vm14 = vcmp.lt.s32.totalorder %v850_v30, %v1814_v11 }
 0x87b   : > { %1411 = vtanh.f32 %v634_v31  ;;  %v649_v52 = vsel %vm647_vm9, %v634_v31, %v580_v27  ;;  %v852_v31 = vsel %vm851_vm14, 1, %v1652_v13 }
 0x881   : > { %v1412_v32 = vpop.eup %1411 }
 0x882   : > { %637 = vrot.lane.b32.xlu2 %v1412_v32, %s1650_s9 }
 0x8dc   : > { %v638_v34 = vpop.permute.xlu2 %637 }
 0x8dd   : > { %v1893_v35 = vmul.f32 %v638_v34, %v622_v23 }
 0x8df   : > { %v648_v36 = vsel %vm647_vm9, %v1893_v35, %v579_v14  ;;  %v650_v9 = vsel %vm647_vm9, %v1893_v35, 0.0 }
 0x8e0   : > { %663 = vrot.lane.b32.xlu1 %v648_v36, %s1651_s27 }
 0x952   : > { %v664_v37 = vpop.permute.xlu1 %663 }
 0x953   : > { %1271 = vmatmul.msk.f32.vlgmr.msrb.gmra.mxu0 %vm377_vm1, %v664_v37 }
 0x9d0   : > { %v684_v39 = vpop.f32.mrf.mxu0 }
 0x9d1   : > { %v687_v40 = vadd.f32 %v684_v39, %v661_v38 }
 0x9d3   : > { %1413 = vtanh.f32 %v687_v40  ;;  %v688_v44 = vmul.f32 0.5, %v687_v40 }
 0x9d5   : > { %1415 = vtanh.f32 %v688_v44 }
 0x9d9   : > { %v1414_v41 = vpop.eup %1413 }
 0x9da   : > { %695 = vrot.lane.b32.xlu2 %v1414_v41, %s1650_s9 }
 0x9db   : > { %v1416_v45 = vpop.eup %1415 }
 0x9dc   : > { %v690_v46 = vmul.f32 0.5, %v1416_v45 }
 0x9de   : > { %v691_v47 = vadd.f32 0.5, %v690_v46 }
 0x9e0   : > { %v693_v53 = vmul.f32 %v691_v47, %v649_v52 }
 0x9e2   : > { %714 = vperm.xlu2 %1386, %v712_v43  }
 0xa34   : > { %v696_v48 = vpop.permute.xlu2 %695 }
 0xa35   : > { %v698_v50 = vmul.f32 %v696_v48, %v691_v47 }
 0xa37   : > { %700 = vrot.lane.b32.xlu0 %v698_v50, %s1651_s27 }
 0xa3c   : > { %v1913_v57 = vpop.permute.xlu2 %714 }
 0xa3d   : > { %vm716_vm11 = vcmp.eq.s32.totalorder %v1913_v57, 1 }
 0xaa9   : > { %v701_v54 = vpop.permute.xlu0 %700 }
 0xaaa   : > { %v703_v55 = vadd.f32 %v701_v54, %v693_v53 }
 0xaac   : > { %1417 = vtanh.f32 %v703_v55  ;;  %v718_v14 = vsel %vm716_vm11, %v703_v55, %v649_v52  ;;  %v1283_v52 = vld [vmem:[%s1144_s20 + $0xe] sm:$0x3]  ;;  %s724_s20 = scalar_lea.vmem %s1985_s17, %s1902_s28 [#allocation9]  ;;  %s977_s28 = sshll.u32 %s1985_s17, 4  ;;  %s978_s28 = int_to_ptr.vmem [resolvable:$true] %s977_s28 }
 0xab2   : > { %v1418_v56 = vpop.eup %1417 }
 0xab3   : > { %706 = vrot.lane.b32.xlu1 %v1418_v56, %s1650_s9  ;;  %v920_v56 = vstv %s867_s10 }
 0xab4   : > { %vm921_vm2 = vcmp.lt.s32.totalorder %v920_v56, %v1814_v11 }
 0xb25   : > { %v707_v58 = vpop.permute.xlu1 %706 }
 0xb26   : > { %v1915_v59 = vmul.f32 %v707_v58, %v691_v47  ;;  %v922_v58 = vsel %vm921_vm2, 1, %v1652_v13  ;;  %v440_v13 = vsel %vm434_vm3, %v1826_v29, 0.0 }
 0xb28   : > { %v717_v60 = vsel %vm716_vm11, %v1915_v59, %v648_v36 }
 0xb29   : > { %733 = vrot.lane.b32.xlu0 %v717_v60, %s1651_s27 }
 0xb9b   : > { %v734_v61 = vpop.permute.xlu0 %733 }
 0xb9c   : > { %1274 = vmatmul.msk.f32.vlgmr.msrb.gmra.mxu1 %vm377_vm1, %v734_v61 }
 0xc19   : > { %v754_v63 = vpop.f32.mrf.mxu1 }
 0xc1a   : > { %v757_v0 = vadd.f32 %v1273_v62, %v754_v63 }
 0xc1c   : > { %1419 = vtanh.f32 %v757_v0  ;;  %v758_v4 = vmul.f32 0.5, %v757_v0 }
 0xc1e   : > { %1421 = vtanh.f32 %v758_v4 }
 0xc22   : > { %v1420_v1 = vpop.eup %1419 }
 0xc23   : > { %765 = vrot.lane.b32.xlu1 %v1420_v1, %s1650_s9 }
 0xc24   : > { %v1422_v5 = vpop.eup %1421 }
 0xc25   : > { %v760_v6 = vmul.f32 0.5, %v1422_v5 }
 0xc27   : > { %v761_v7 = vadd.f32 0.5, %v760_v6 }
 0xc29   : > { %v763_v15 = vmul.f32 %v761_v7, %v718_v14 }
 0xc2b   : > { %784 = vperm.xlu1 %1387, %v782_v3  }
 0xc95   : > { %v766_v8 = vpop.permute.xlu1 %765 }
 0xc96   : > { %v768_v10 = vmul.f32 %v766_v8, %v761_v7  ;;  %v719_v8 = vsel %vm716_vm11, %v1915_v59, 0.0 }
 0xc98   : > { %770 = vrot.lane.b32.xlu2 %v768_v10, %s1651_s27 }
 0xc9d   : > { %v785_v19 = vpop.permute.xlu1 %784 }
 0xc9e   : > { %vm786_vm13 = vcmp.eq.s32.totalorder %v785_v19, 1 }
 0xcf2   : > { %v771_v16 = vpop.permute.xlu2 %770 }
 0xcf3   : > { %v773_v17 = vadd.f32 %v771_v16, %v763_v15 }
 0xcf5   : > { %1423 = vtanh.f32 %v773_v17  ;;  %v788_v40 = vsel %vm786_vm13, %v773_v17, %v718_v14 }
 0xcfb   : > { %v1424_v18 = vpop.eup %1423 }
 0xcfc   : > { %776 = vrot.lane.b32.xlu0 %v1424_v18, %s1650_s9 }
 0xd6e   : > { %v777_v20 = vpop.permute.xlu0 %776 }
 0xd6f   : > { %v779_v21 = vmul.f32 %v777_v20, %v761_v7  ;;  %v511_v7 = vsel %vm508_vm5, %v1848_v51, 0.0 }
 0xd71   : > { %v787_v22 = vsel %vm786_vm13, %v779_v21, %v717_v60  ;;  %v581_v60 = vsel %vm578_vm8, %v1873_v12, 0.0  ;;  %v789_v61 = vsel %vm786_vm13, %v779_v21, 0.0 }
 0xd72   : > { %803 = vrot.lane.b32.xlu2 %v787_v22, %s1651_s27 }
 0xdcc   : > { %v804_v23 = vpop.permute.xlu2 %803 }
 0xdcd   : > { %1279 = vmatmul.msk.f32.vlgmr.msrb.gmra.mxu2 %vm377_vm1, %v804_v23 }
 0xe50   : > { %v824_v25 = vpop.f32.mrf.mxu2 }
 0xe51   : > { %v827_v27 = vadd.f32 %v1278_v24, %v824_v25 }
 0xe53   : > { %1425 = vtanh.f32 %v827_v27  ;;  %v828_v32 = vmul.f32 0.5, %v827_v27 }
 0xe55   : > { %1427 = vtanh.f32 %v828_v32 }
 0xe59   : > { %v1426_v28 = vpop.eup %1425 }
 0xe5a   : > { %835 = vrot.lane.b32.xlu0 %v1426_v28, %s1650_s9 }
 0xe5b   : > { %v1428_v34 = vpop.eup %1427 }
 0xe5c   : > { %v830_v36 = vmul.f32 0.5, %v1428_v34 }
 0xe5e   : > { %v831_v37 = vadd.f32 0.5, %v830_v36 }
 0xe60   : > { %v833_v41 = vmul.f32 %v831_v37, %v788_v40 }
 0xe62   : > { %854 = vperm.xlu0 %1388, %v852_v31  }
 0xecc   : > { %v836_v38 = vpop.permute.xlu0 %835 }
 0xecd   : > { %v838_v39 = vmul.f32 %v836_v38, %v831_v37 }
 0xecf   : > { %840 = vrot.lane.b32.xlu1 %v838_v39, %s1651_s27 }
 0xed4   : > { %v855_v45 = vpop.permute.xlu0 %854 }
 0xed5   : > { %vm856_vm15 = vcmp.eq.s32.totalorder %v855_v45, 1 }
 0xf41   : > { %v841_v42 = vpop.permute.xlu1 %840 }
 0xf42   : > { %v843_v43 = vadd.f32 %v841_v42, %v833_v41 }
 0xf44   : > { %1429 = vtanh.f32 %v843_v43  ;;  %v858_v3 = vsel %vm856_vm15, %v843_v43, %v788_v40 }
 0xf4a   : > { %v1430_v44 = vpop.eup %1429 }
 0xf4b   : > { %846 = vrot.lane.b32.xlu2 %v1430_v44, %s1650_s9 }
 0xfa5   : > { %v847_v46 = vpop.permute.xlu2 %846 }
 0xfa6   : > { %v849_v47 = vmul.f32 %v847_v46, %v831_v37 }
 0xfa8   : > { %v1950_v48 = vsel %vm856_vm15, %v849_v47, %v787_v22  ;;  %v859_v12 = vsel %vm856_vm15, %v849_v47, 0.0 }
 0xfa9   : > { %873 = vrot.lane.b32.xlu1 %v1950_v48, %s1651_s27 }
0x101b   : > { %v874_v50 = vpop.permute.xlu1 %873 }
0x101c   : > { %1284 = vmatmul.msk.f32.vlgmr.msrb.gmra.mxu3 %vm377_vm1, %v874_v50 }
0x109f   : > { %v894_v53 = vpop.f32.mrf.mxu3 }
0x10a0   : > { %v897_v54 = vadd.f32 %v1283_v52, %v894_v53 }
0x10a2   : > { %1431 = vtanh.f32 %v897_v54  ;;  %v898_v62 = vmul.f32 0.5, %v897_v54 }
0x10a4   : > { %1433 = vtanh.f32 %v898_v62 }
0x10a8   : > { %v1432_v55 = vpop.eup %1431 }
0x10a9   : > { %905 = vrot.lane.b32.xlu2 %v1432_v55, %s1650_s9 }
0x10aa   : > { %v1434_v63 = vpop.eup %1433 }
0x10ab   : > { %v900_v0 = vmul.f32 0.5, %v1434_v63 }
0x10ad   : > { %v901_v1 = vadd.f32 0.5, %v900_v0 }
0x10af   : > { %v903_v5 = vmul.f32 %v901_v1, %v858_v3 }
0x10b1   : > { %924 = vperm.xlu2 %1386, %v922_v58  }
0x10b9   : > { %583 = vrot.lane.b32.xlu2 %v581_v60, %s1651_s27 }
0x10c1   : > { %791 = vrot.lane.b32.xlu2 %v789_v61, %s1651_s27 }
0x1103   : > { %v906_v2 = vpop.permute.xlu2 %905 }
0x1104   : > { %v908_v11 = vmul.f32 %v906_v2, %v901_v1 }
0x1106   : > { %910 = vrot.lane.b32.xlu0 %v908_v11, %s1651_s27 }
0x110b   : > { %v925_v4 = vpop.permute.xlu2 %924 }
0x110c   : > { %vm926_vm1 = vcmp.eq.s32.totalorder %v925_v4, 1 }
0x110e   : > { %442 = vrot.lane.b32.xlu0 %v440_v13, %s1651_s27 }
0x1113   : > { %v584_v16 = vpop.permute.xlu2 %583 }
0x1116   : > { %652 = vrot.lane.b32.xlu0 %v650_v9, %s1651_s27 }
0x111b   : > { %v792_v19 = vpop.permute.xlu2 %791 }
0x111e   : > { %861 = vrot.lane.b32.xlu0 %v859_v12, %s1651_s27 }
0x1178   : > { %v911_v26 = vpop.permute.xlu0 %910 }
0x1179   : > { %v913_v6 = vadd.f32 %v911_v26, %v903_v5 }
0x117b   : > { %1435 = vtanh.f32 %v913_v6  ;;  %v928_v29 = vsel %vm926_vm1, %v913_v6, %v858_v3 }
0x117c   : > { %942 = vrot.lane.b32.xlu0 %v928_v29, %s1653_s12  ;;  %s1114_s12 = scalar_lea.vmem %s1985_s17, %s1260_s16 [#allocation9]  ;;  %s1298_s16 = sshll.u32 %s1635_s21, 4 }
0x1180   : > { %v443_v33 = vpop.permute.xlu0 %442 }
0x1181   : > { %v1436_v35 = vpop.eup %1435  ;;  %447 = vst.msk [vmem:[%s445_s11] sm:$0x3] %vm357_vm0, %v443_v33 }
0x1182   : > { %916 = vrot.lane.b32.xlu1 %v1436_v35, %s1650_s9  ;;  %s1106_s9 = scalar_lea.vmem %s1985_s17, %s1255_s13 [#allocation9]  ;;  %s1140_s13 = scalar_lea.vmem %s1985_s17, %s1277_s8 [#allocation9] }
0x1183   : > { %s949_s8 = scalar_lea.sflag [#allocation6], %s1783_s25 }
0x1188   : > { %v653_v10 = vpop.permute.xlu0 %652 }
0x118a   : > { %513 = vrot.lane.b32.xlu1 %v511_v7, %s1651_s27 }
0x1190   : > { %v862_v14 = vpop.permute.xlu0 %861 }
0x1192   : > { %721 = vrot.lane.b32.xlu1 %v719_v8, %s1651_s27 }
0x11ee   : > { %v943_v15 = vpop.permute.xlu0 %942 }
0x11ef   : > { %945 = vst.msk [vmem:[#allocation3] sm:$0x3] %vm357_vm0, %v943_v15 }
0x11f0   : > { %947 = vst.msk [vmem:[%s2004_s30] sm:$0x3] %vm357_vm0, %v943_v15 }
0x11f4   : > { %v917_v49 = vpop.permute.xlu1 %916 }
0x11f5   : > { %v919_v51 = vmul.f32 %v917_v49, %v901_v1 }
0x11f7   : > { %v929_v57 = vsel %vm926_vm1, %v919_v51, 0.0  ;;  %v927_v59 = vsel %vm926_vm1, %v919_v51, %v1950_v48 }
0x11f8   : > { %931 = vrot.lane.b32.xlu2 %v929_v57, %s1651_s27  ;;  %937 = vrot.lane.b32.xlu1 %v927_v59, %s1651_s27 }
0x11fc   : > { %v514_v17 = vpop.permute.xlu1 %513 }
0x11fd   : > { %1259 = vst.msk [vmem:[%s1106_s9 + $0x2] sm:$0x3] %vm357_vm0, %v514_v17  ;;  %s976_s9 = scalar_lea.hbm %s2129_s3, %s1298_s16  ;;  %s1517_s16 = scalar_lea.hbm %s2129_s3, 32 }
0x11fe   : > { %1264 = vst.msk [vmem:[%s1114_s12 + $0x4] sm:$0x3] %vm357_vm0, %v584_v16  ;;  %s979_s12 = sshll.u32 %s976_s9, 4  ;;  %s980_s12 = int_to_ptr.hbm [resolvable:$true] %s979_s12 }
0x11ff   : > { %1269 = vst.msk [vmem:[%s1120_s14 + $0x6] sm:$0x3] %vm357_vm0, %v653_v10  ;;  %s1511_s14 = sshra.s32 %s980_s12, 4  ;;  %s1512_s14 = int_to_ptr.hbm [resolvable:$true] %s1511_s14 }
0x1200   : > { %p1518_p7 = scmp.lt.s32.totalorder %s1512_s14, %s2129_s3 }
0x1204   : > { %v722_v18 = vpop.permute.xlu1 %721 }
0x1205   : > { %725 = vst.msk [vmem:[%s724_s20] sm:$0x3] %vm357_vm0, %v722_v18  ;;  %s1513_s20 = scalar_lea.hbm %s1512_s14, 16 }
0x1206   : > { %1276 = vst.msk [vmem:[%s1132_s7 + $0xa] sm:$0x3] %vm357_vm0, %v792_v19  ;;  %p1514_p4 = scmp.ne.s32.totalorder %s1512_s14, %s1513_s20  ;;  %p1519_p8 = scmp.lt.s32.totalorder %s1517_s16, %s1513_s20 }
0x1207   : > { %1281 = vst.msk [vmem:[%s1140_s13 + $0xc] sm:$0x3] %vm357_vm0, %v862_v14 }
0x1208   : > { %p1515_p5 = pnand %p1514_p4, %p1740_p9  ;;  %p1520_p10 = por %p1519_p8, %p1518_p7 }
0x120a   : > { %p1516_p6 = pneg %p1515_p5 }
0x120c   : > { %p1521_p13 = pnand %p1520_p10, %p1516_p6 }
0x1252   : > { %v932_v20 = vpop.permute.xlu2 %931 }
0x1253   : > { %1286 = vst.msk [vmem:[%s1148_s15 + $0xe] sm:$0x3] %vm357_vm0, %v932_v20 }
0x1254   : > { %1524 = shalt.err (!%p1521_p13)
}
0x1255   : > { %s1654_s21 = smov 2   ;;  %s992_s9 = scalar_lea.hbm %s2130_s4, %s1882_s29 }
0x1256   : > { %1303 = dma.vmem_to_hbm [thread:$0]  (%p1740_p9), %s978_s28, 256, %s980_s12, %s949_s8, %s1651_s27, %s1651_s27, %s1654_s21  }
0x1257   : > { %s1006_s20 = scalar_lea.hbm %s2131_s5, %s1882_s29  ;;  %s953_s7 = sand.u32 1, %s1716_s24  }
0x1258   : > { %s335_s13 = scalar_lea.vmem [#allocation10], %s1251_s26  ;;  %s996_s10 = sshll.u32 %s992_s9, 4  ;;  %s997_s10 = int_to_ptr.hbm [resolvable:$true] %s996_s10 }
0x1259   : > { %s994_s16 = sshll.u32 %s335_s13, 4  ;;  %s1008_s11 = sshll.u32 %s2004_s30, 4  ;;  %s995_s16 = int_to_ptr.vmem [resolvable:$true] %s994_s16  ;;  %s2072_s11 = int_to_ptr.vmem [resolvable:$true] %s1008_s11 }
0x125a   : > { %s2069_s0 = sshll.u32 %s1006_s20, 4  ;;  %s954_s24 = scalar_lea.sflag [#allocation11], %s953_s7  ;;  %s1011_s0 = int_to_ptr.hbm [resolvable:$true] %s2069_s0 }
0x125b   : > { %s1539_s25 = sshra.s32 %s997_s10, 4  ;;  %s1545_s30 = scalar_lea.hbm %s2130_s4, 4  ;;  %s1540_s25 = int_to_ptr.hbm [resolvable:$true] %s1539_s25 }
0x125c   : > { %s1541_s27 = scalar_lea.hbm %s1540_s25, 2  ;;  %p1546_p3 = scmp.lt.s32.totalorder %s1540_s25, %s2130_s4 }
0x125d   : > { %p1542_p0 = scmp.ne.s32.totalorder %s1540_s25, %s1541_s27  ;;  %p1547_p4 = scmp.lt.s32.totalorder %s1545_s30, %s1541_s27 }
0x125f   : > { %p1543_p1 = pnand %p1542_p0, %p1740_p9  ;;  %p1548_p5 = por %p1547_p4, %p1546_p3 }
0x1261   : > { %p1544_p2 = pneg %p1543_p1 }
0x1263   : > { %p1549_p6 = pnand %p1548_p5, %p1544_p2 }
0x126a   : > { %v938_v21 = vpop.permute.xlu1 %937 }
0x126b   : > { %940 = vst.msk [vmem:[#allocation2] sm:$0x3] %vm357_vm0, %v938_v21 }
0x126c   : > { %946 = vst.msk [vmem:[%s335_s13] sm:$0x3] %vm357_vm0, %v938_v21 }
0x126d   : > { %1552 = shalt.err (!%p1549_p6)
}
0x126e   : > { %1304 = dma.vmem_to_hbm [thread:$0]  (%p1740_p9), %s995_s16, 32, %s997_s10, %s954_s24  }
0x126f   : > { %s1567_s8 = sshra.s32 %s1011_s0, 4  ;;  %s1573_s9 = scalar_lea.hbm %s2131_s5, 4  ;;  %s1568_s8 = int_to_ptr.hbm [resolvable:$true] %s1567_s8 }
0x1270   : > { %s1569_s21 = scalar_lea.hbm %s1568_s8, 2  ;;  %p1574_p13 = scmp.lt.s32.totalorder %s1568_s8, %s2131_s5 }
0x1271   : > { %p1570_p7 = scmp.ne.s32.totalorder %s1568_s8, %s1569_s21  ;;  %p1575_p0 = scmp.lt.s32.totalorder %s1573_s9, %s1569_s21 }
0x1273   : > { %p1571_p8 = pnand %p1570_p7, %p1740_p9  ;;  %p1576_p1 = por %p1575_p0, %p1574_p13 }
0x1275   : > { %p1572_p10 = pneg %p1571_p8 }
0x1277   : > { %p1577_p2 = pnand %p1576_p1, %p1572_p10 }
0x1279   : > { %1580 = shalt.err (!%p1577_p2)
}
0x127a   : > { %1305 = dma.vmem_to_hbm [thread:$0]  (%p1740_p9), %s2072_s11, 32, %s1011_s0, %s954_s24  }
0x127b PF: > { %s1022_s7 = sand.u32 1, %s1623_s18   ;;  %p1317_p3 = pnand %p1240_p12, %p1749_p11 }
0x127c   : > { %s1023_s13 = scalar_lea.sflag [#allocation6], %s1022_s7 }
0x127d   : > { %p1318_p4 = pneg %p1317_p3 }
0x127f   : > { %1614 = dma.done.wait (%p1318_p4), %s1023_s13, 256  }
0x1280   : > { %1616 = vsyncadd (%p1318_p4), %s1023_s13, 4294967040  ;;  %s2150_s16 = sadd.s32 4294967294, %s1643_s23  }
0x1281   : > { %s1032_s10 = sand.u32 1, %s2150_s16  }
0x1282   : > { %s1033_s6 = scalar_lea.sflag [#allocation11], %s1032_s10 }
0x1283   : > { %1618 = dma.done.wait (%p1318_p4), %s1033_s6, 64  }
0x1284   : > { %1620 = vsyncadd (%p1318_p4), %s1033_s6, 4294967232  ;;  %s28_s23 = sadd.s32 1, %s1643_s23   ;;  %s2151_s0 = sld [smem:[#allocation17_spill]] }
0x1285   : > { %p25_p9 = scmp.ge.s32.totalorder %s28_s23, 4   ;;  %s2152_s20 = sld [smem:[#allocation19_spill]] }
0x1286   : > { %s2153_s11 = sld [smem:[#allocation18_spill]]  ;;  %s2154_s18 = smov %s1627_s19 }
0x1287   : > { %s2156_s21 = smov %s1639_s22 }
0x1288   :  { %27 = sbr.rel (!%p25_p9) target bundleno = 13 (0xd), region = 142 }
0x128a   : > { %s2155_s19 = smov %s2151_s0 }
0x128c   : > { %s2157_s22 = smov %s2153_s11 }
0x128d   :  { %1049 = vsyncpa [#allocation5], 1 }
0x128e   :  { %1051 = vsyncpa [#allocation5 + $0x1], 1 }
0x128f   :  { %1052 = vsyncpa [#allocation8], 1 }
0x1290   :  { %1054 = vsyncpa [#allocation8 + $0x1], 1 }
0x1291   :  { %1055 = vsyncpa [#allocation6], 1 }
0x1292   :  { %1057 = vsyncpa [#allocation6 + $0x1], 1 }
0x1293   :  { %1058 = vsyncpa [#allocation11], 1 }
0x1294   :  { %1060 = vsyncpa [#allocation11 + $0x1], 1 }

</bundles_post_ra>
